<compile_context>
chip_gen: v6e
topology: v6e:2x2x1
jax: 0.10.0
libtpu: 0.0.40
codegen_flags: <defaults>
</compile_context>

<pallas_src>
import functools

import jax
import jax.numpy as jnp
from jax.experimental import pallas as pl
from jax.experimental.pallas import tpu as pltpu

TAU = 0.5        # Selector.tau
SEL_K = 10       # Selector.k (number of gumbel samples)
CH = 100         # logical conv channel count in Selector
CH_PAD = 128     # lane-padded channel count used by the kernel


# ------------------------------ fused kernel --------------------------------

def _l2x_fused_kernel(
        xp_ref, ep_ref, gn_ref, mg_ref, ml_ref,
        c1w_ref, c1b_ref, gw_ref, gb_ref,
        lw_ref, lb_ref, liw_ref, lib_ref,
        f1g_ref, f1l_ref, f1b_ref, f2w_ref, f2b_ref,
        l1w_ref, l1b_ref, l2w_ref, l2b_ref,
        o_ref,
        *, ksize, t_len, inv_tau, inv_k):
    """One batch element per grid step; everything stays in VMEM."""
    T = t_len
    CHP = c1b_ref.shape[1]
    f32 = jnp.float32
    bf16 = jnp.bfloat16

    # ---- Selector.conv1d (E -> CH, padding='same') + ReLU ------------------
    # Input rows are pre-padded in the glue; the conv is K shifted MXU taps.
    xp = xp_ref[...]                                      # (T+ksize-1, E) f32
    acc = jnp.zeros((T, CHP), f32)
    for j in range(ksize):
        acc = acc + jnp.dot(xp[j:j + T, :].astype(bf16), c1w_ref[j],
                            preferred_element_type=f32)
    x_base = jnp.maximum(acc + c1b_ref[...], 0.0)         # (T, CHP)

    # ---- global branch: AdaptiveMaxPool1d(1) + Linear + ReLU ---------------
    g = jnp.max(x_base, axis=0, keepdims=True)            # (1, CHP)
    g = jnp.dot(g.astype(bf16), gw_ref[...], preferred_element_type=f32)
    g = jnp.maximum(g + gb_ref[...], 0.0)                 # (1, CHP)

    # ---- local branch: two K=3 'same' convs + ReLU -------------------------
    def conv3(h, w_ref, b_ref):
        zero = jnp.zeros((1, CHP), f32)
        hp = jnp.concatenate([zero, h, zero], axis=0)     # (T+2, CHP)
        a = jnp.zeros((T, CHP), f32)
        for j in range(3):
            a = a + jnp.dot(hp[j:j + T, :].astype(bf16), w_ref[j],
                            preferred_element_type=f32)
        return jnp.maximum(a + b_ref[...], 0.0)

    lx = conv3(x_base, lw_ref, lb_ref)
    lx = conv3(lx, liw_ref, lib_ref)                      # (T, CHP)

    # ---- dropout2 + final_conv1d (1x1, 200 -> 100) + ReLU ------------------
    # combined = [tile(g), lx] is never built: combined @ W
    #   = (g * mask_g) @ W_g + (lx * mask_l) @ W_l   (masks are pre-scaled).
    g_drop = g.astype(bf16) * mg_ref[...]                 # (T, CHP) bf16
    l_drop = lx.astype(bf16) * ml_ref[...]                # (T, CHP) bf16
    f1 = (jnp.dot(g_drop, f1g_ref[...], preferred_element_type=f32)
          + jnp.dot(l_drop, f1l_ref[...], preferred_element_type=f32)
          + f1b_ref[...])
    f1 = jnp.maximum(f1, 0.0)                             # (T, CHP)

    # ---- final_conv1d2 (1x1, 100 -> 1): VPU multiply + lane reduce ---------
    logits = jnp.sum(f1 * f2w_ref[...], axis=1, keepdims=True) + f2b_ref[...]
    # logits: (T, 1)

    # ---- gumbel-softmax selection (training branch of Selector) ------------
    noisy = (gn_ref[...] + logits) * inv_tau              # (T, SEL_K)
    m = jnp.max(noisy, axis=0, keepdims=True)             # softmax over T
    e = jnp.exp(noisy - m)
    denom = jnp.sum(e, axis=0, keepdims=True)
    sm = e * pl.reciprocal(denom, approx=True)
    sel = jnp.max(sm, axis=1, keepdims=True)              # (T, 1) max over k

    # ---- Predictor: weighted mean + linear1 + ReLU + linear2 ---------------
    agg = jnp.sum(ep_ref[...] * sel, axis=0, keepdims=True) * inv_k   # (1, E)
    h = jnp.dot(agg.astype(bf16), l1w_ref[...], preferred_element_type=f32)
    h = jnp.maximum(h + l1b_ref[...], 0.0)                # (1, H)
    q = jnp.dot(h, l2w_ref[...], preferred_element_type=f32) + l2b_ref[...]
    o_ref[...] = q                                        # (1, 2)


# ----------------------------- pallas wrapper --------------------------------

def _batch_spec(shape):
    nd = len(shape)
    return pl.BlockSpec((None,) + tuple(shape[1:]),
                        lambda b, _n=nd: (b,) + (0,) * (_n - 1))


def _weight_spec(shape):
    nd = len(shape)
    return pl.BlockSpec(tuple(shape), lambda b, _n=nd: (0,) * _n)


def l2x_pallas_call(xp, ep, gn, mg, ml, p, *, ksize, t_len, tau, pred_k):
    B = xp.shape[0]
    kernel = functools.partial(_l2x_fused_kernel, ksize=ksize, t_len=t_len,
                               inv_tau=1.0 / float(tau),
                               inv_k=1.0 / float(pred_k))

    batch_args = (xp, ep, gn, mg, ml)
    weight_args = (p["conv1_w"], p["conv1_b"], p["glob_w"], p["glob_b"],
                   p["local_w"], p["local_b"],
                   p["local_info_w"], p["local_info_b"],
                   p["final1_wg"], p["final1_wl"], p["final1_b"],
                   p["final2_w"], p["final2_b"],
                   p["lin1_w"], p["lin1_b"], p["lin2_w"], p["lin2_b"])

    in_specs = ([_batch_spec(a.shape) for a in batch_args]
                + [_weight_spec(a.shape) for a in weight_args])

    out = pl.pallas_call(
        kernel,
        out_shape=jax.ShapeDtypeStruct((B, 1, 2), jnp.float32),
        grid=(B,),
        in_specs=in_specs,
        out_specs=pl.BlockSpec((None, 1, 2), lambda b: (b, 0, 0)),
        compiler_params=pltpu.CompilerParams(
            dimension_semantics=("parallel",),          # megacore on v7x
            vmem_limit_bytes=32 * 1024 * 1024),
    )(*batch_args, *weight_args)
    return out.reshape(B, 2)


# ------------------------------ plain-JAX glue -------------------------------

@functools.partial(jax.jit, static_argnames=("kernel_size", "pred_k"))
def l2x_forward(params, tokens, rng, *, kernel_size, pred_k):
    B, T = tokens.shape
    kd1, kdg, kdl, kg = jax.random.split(rng, 4)

    # Selector embedding: row gather (no one-hot matmul) + dropout(0.2),
    # then 'same' pre-padding for conv1; XLA fuses these into one pass.
    x = jnp.take(params["sel_emb"], tokens, axis=0)               # (B, T, E)
    keep = jax.random.bernoulli(kd1, 0.8, x.shape)
    x = jnp.where(keep, x * (1.0 / 0.8), 0.0)
    pad_l = (kernel_size - 1) // 2
    pad_r = (kernel_size - 1) - pad_l
    xp = jnp.pad(x, ((0, 0), (pad_l, pad_r), (0, 0)))             # (B, T+K-1, E)

    # Predictor embedding gather.
    ep = jnp.take(params["pred_emb"], tokens, axis=0)             # (B, T, E)

    # Dropout-2 masks (pre-scaled keep/(1-p)), one per half of
    # `combined` = [tile(global), local]; bf16 to halve their bytes.
    # TODO(synk): could be generated in-kernel with pltpu.prng_random_bits.
    mg = (jax.random.bernoulli(kdg, 0.8, (B, T, CH_PAD)).astype(jnp.float32)
          * (1.0 / 0.8)).astype(jnp.bfloat16)
    ml = (jax.random.bernoulli(kdl, 0.8, (B, T, CH_PAD)).astype(jnp.float32)
          * (1.0 / 0.8)).astype(jnp.bfloat16)

    # Gumbel noise for the k relaxed samples (avoids -log(-log(0)) NaNs).
    gn = jax.random.gumbel(kg, (B, T, SEL_K), dtype=jnp.float32)

    # TODO(synk): eval/topk branch of Selector.forward is shape-inconsistent
    # with Predictor for general (T, E) in the reference; only the training
    # (gumbel-softmax) path is implemented.
    return l2x_pallas_call(xp, ep, gn, mg, ml, params,
                           ksize=kernel_size, t_len=T, tau=TAU, pred_k=pred_k)


def init_params(key, vocab_size, emb_size, kernel_size, hidden_size):
    ks = jax.random.split(key, 19)

    def norm(k, shape, scale=0.1):
        return (scale * jax.random.normal(k, shape)).astype(jnp.float32)

    def pad_ch(x, *axes):
        pads = [(0, 0)] * x.ndim
        for ax in axes:
            pads[ax] = (0, CH_PAD - x.shape[ax])
        return jnp.pad(x, pads)

    E, K, H = emb_size, kernel_size, hidden_size
    # Conv weights are stored feature-last as (tap, C_in, C_out).  Channel
    # dims are zero-padded 100 -> 128 (padding is exact zeros, so the math
    # equals the unpadded CH=100 model); MXU-side weights are bf16.
    p = {
        # Selector ------------------------------------------------------------
        "sel_emb": norm(ks[0], (vocab_size, E)),
        "conv1_w": pad_ch(norm(ks[1], (K, E, CH)), 2).astype(jnp.bfloat16),
        "conv1_b": pad_ch(norm(ks[2], (1, CH)), 1),
        "glob_w": pad_ch(norm(ks[3], (CH, CH)), 0, 1).astype(jnp.bfloat16),
        "glob_b": pad_ch(norm(ks[4], (1, CH)), 1),
        "local_w": pad_ch(norm(ks[5], (3, CH, CH)), 1, 2).astype(jnp.bfloat16),
        "local_b": pad_ch(norm(ks[6], (1, CH)), 1),
        "local_info_w": pad_ch(norm(ks[7], (3, CH, CH)), 1, 2).astype(jnp.bfloat16),
        "local_info_b": pad_ch(norm(ks[8], (1, CH)), 1),
        # final_conv1d (1x1, 200->100) split into [global-half, local-half]
        "final1_wg": pad_ch(norm(ks[9], (CH, CH)), 0, 1).astype(jnp.bfloat16),
        "final1_wl": pad_ch(norm(ks[10], (CH, CH)), 0, 1).astype(jnp.bfloat16),
        "final1_b": pad_ch(norm(ks[11], (1, CH)), 1),
        "final2_w": pad_ch(norm(ks[12], (1, CH)), 1),   # 1x1 conv 100 -> 1
        "final2_b": norm(ks[13], (1, 1)),
        # Predictor -----------------------------------------------------------
        "pred_emb": norm(ks[14], (vocab_size, E)),
        "lin1_w": norm(ks[15], (E, H)).astype(jnp.bfloat16),
        "lin1_b": norm(ks[16], (1, H)),
        "lin2_w": norm(ks[17], (H, 2)),
        "lin2_b": norm(ks[18], (1, 2)),
    }
    return p


# ---------------------------------- main -------------------------------------

if __name__ == "__main__":
    VOCAB, EMB, KSIZE, HIDDEN, PRED_K = 64, 32, 3, 32, 10
    B, T = 2, 16

    root = jax.random.PRNGKey(0)
    pkey, tkey, fkey = jax.random.split(root, 3)

    params = init_params(pkey, VOCAB, EMB, KSIZE, HIDDEN)
    tokens = jax.random.randint(tkey, (B, T), 0, VOCAB, dtype=jnp.int32)

    out = l2x_forward(params, tokens, fkey, kernel_size=KSIZE, pred_k=PRED_K)
    out = jax.block_until_ready(out)

    assert out.shape == (B, 2), out.shape
    assert bool(jnp.all(jnp.isfinite(out)))
    print("KERNEL_OK")
</pallas_src>

<mosaic_0001>
module attributes {stable_mosaic.version = 11 : i64} {
  func.func @_l2x_fused_kernel(%arg0: i32, %arg1: memref<1x18x32xf32, #tpu.memory_space<vmem>>, %arg2: memref<1x16x32xf32, #tpu.memory_space<vmem>>, %arg3: memref<1x16x10xf32, #tpu.memory_space<vmem>>, %arg4: memref<1x16x128xbf16, #tpu.memory_space<vmem>>, %arg5: memref<1x16x128xbf16, #tpu.memory_space<vmem>>, %arg6: memref<3x32x128xbf16, #tpu.memory_space<vmem>>, %arg7: memref<1x128xf32, #tpu.memory_space<vmem>>, %arg8: memref<128x128xbf16, #tpu.memory_space<vmem>>, %arg9: memref<1x128xf32, #tpu.memory_space<vmem>>, %arg10: memref<3x128x128xbf16, #tpu.memory_space<vmem>>, %arg11: memref<1x128xf32, #tpu.memory_space<vmem>>, %arg12: memref<3x128x128xbf16, #tpu.memory_space<vmem>>, %arg13: memref<1x128xf32, #tpu.memory_space<vmem>>, %arg14: memref<128x128xbf16, #tpu.memory_space<vmem>>, %arg15: memref<128x128xbf16, #tpu.memory_space<vmem>>, %arg16: memref<1x128xf32, #tpu.memory_space<vmem>>, %arg17: memref<1x128xf32, #tpu.memory_space<vmem>>, %arg18: memref<1x1xf32, #tpu.memory_space<vmem>>, %arg19: memref<32x32xbf16, #tpu.memory_space<vmem>>, %arg20: memref<1x32xf32, #tpu.memory_space<vmem>>, %arg21: memref<32x2xf32, #tpu.memory_space<vmem>>, %arg22: memref<1x2xf32, #tpu.memory_space<vmem>>, %arg23: memref<1x1x2xf32, #tpu.memory_space<vmem>>) attributes {dimension_semantics = [#tpu.dimension_semantics<parallel>], iteration_bounds = array<i64: 2>, scalar_prefetch = 0 : i64, scratch_operands = 0 : i64, tpu.core_type = #tpu.core_type<tc>, window_params = [{transform_indices = @transform_0, window_bounds = array<i64: 1, 18, 32>}, {transform_indices = @transform_1, window_bounds = array<i64: 1, 16, 32>}, {transform_indices = @transform_2, window_bounds = array<i64: 1, 16, 10>}, {transform_indices = @transform_3, window_bounds = array<i64: 1, 16, 128>}, {transform_indices = @transform_4, window_bounds = array<i64: 1, 16, 128>}, {pipeline_mode = #tpu.pipeline_mode<synchronous>, transform_indices = @transform_5, window_bounds = array<i64: 3, 32, 128>}, {pipeline_mode = #tpu.pipeline_mode<synchronous>, transform_indices = @transform_6, window_bounds = array<i64: 1, 128>}, {pipeline_mode = #tpu.pipeline_mode<synchronous>, transform_indices = @transform_7, window_bounds = array<i64: 128, 128>}, {pipeline_mode = #tpu.pipeline_mode<synchronous>, transform_indices = @transform_8, window_bounds = array<i64: 1, 128>}, {pipeline_mode = #tpu.pipeline_mode<synchronous>, transform_indices = @transform_9, window_bounds = array<i64: 3, 128, 128>}, {pipeline_mode = #tpu.pipeline_mode<synchronous>, transform_indices = @transform_10, window_bounds = array<i64: 1, 128>}, {pipeline_mode = #tpu.pipeline_mode<synchronous>, transform_indices = @transform_11, window_bounds = array<i64: 3, 128, 128>}, {pipeline_mode = #tpu.pipeline_mode<synchronous>, transform_indices = @transform_12, window_bounds = array<i64: 1, 128>}, {pipeline_mode = #tpu.pipeline_mode<synchronous>, transform_indices = @transform_13, window_bounds = array<i64: 128, 128>}, {pipeline_mode = #tpu.pipeline_mode<synchronous>, transform_indices = @transform_14, window_bounds = array<i64: 128, 128>}, {pipeline_mode = #tpu.pipeline_mode<synchronous>, transform_indices = @transform_15, window_bounds = array<i64: 1, 128>}, {pipeline_mode = #tpu.pipeline_mode<synchronous>, transform_indices = @transform_16, window_bounds = array<i64: 1, 128>}, {pipeline_mode = #tpu.pipeline_mode<synchronous>, transform_indices = @transform_17, window_bounds = array<i64: 1, 1>}, {pipeline_mode = #tpu.pipeline_mode<synchronous>, transform_indices = @transform_18, window_bounds = array<i64: 32, 32>}, {pipeline_mode = #tpu.pipeline_mode<synchronous>, transform_indices = @transform_19, window_bounds = array<i64: 1, 32>}, {pipeline_mode = #tpu.pipeline_mode<synchronous>, transform_indices = @transform_20, window_bounds = array<i64: 32, 2>}, {pipeline_mode = #tpu.pipeline_mode<synchronous>, transform_indices = @transform_21, window_bounds = array<i64: 1, 2>}, {transform_indices = @transform_22, window_bounds = array<i64: 1, 1, 2>}]} {
    %c0 = arith.constant 0 : index
    %c0_0 = arith.constant 0 : index
    %c0_1 = arith.constant 0 : index
    %0 = vector.load %arg1[%c0, %c0_0, %c0_1] : memref<1x18x32xf32, #tpu.memory_space<vmem>>, vector<1x18x32xf32>
    %1 = vector.shape_cast %0 : vector<1x18x32xf32> to vector<18x32xf32>
    %cst = arith.constant 0.000000e+00 : f32
    %2 = vector.broadcast %cst : f32 to vector<16x128xf32>
    %3 = vector.extract_strided_slice %1 {offsets = [0, 0], sizes = [16, 32], strides = [1, 1]} : vector<18x32xf32> to vector<16x32xf32>
    %4 = arith.truncf %3 : vector<16x32xf32> to vector<16x32xbf16>
    %c0_2 = arith.constant 0 : index
    %c0_3 = arith.constant 0 : index
    %c0_4 = arith.constant 0 : index
    %5 = vector.load %arg6[%c0_2, %c0_3, %c0_4] : memref<3x32x128xbf16, #tpu.memory_space<vmem>>, vector<1x32x128xbf16>
    %6 = vector.shape_cast %5 : vector<1x32x128xbf16> to vector<32x128xbf16>
    %cst_5 = arith.constant dense<0.000000e+00> : vector<16x128xf32>
    %7 = tpu.matmul %4, %6, %cst_5 {dimension_numbers = #tpu.dot_dimension_numbers<[1], [0], [0], [1], [0, 0, 1, 1], [], []>} : vector<16x32xbf16>, vector<32x128xbf16>, vector<16x128xf32> -> vector<16x128xf32>
    %8 = arith.addf %2, %7 : vector<16x128xf32>
    %9 = vector.extract_strided_slice %1 {offsets = [1, 0], sizes = [16, 32], strides = [1, 1]} : vector<18x32xf32> to vector<16x32xf32>
    %10 = arith.truncf %9 : vector<16x32xf32> to vector<16x32xbf16>
    %c1 = arith.constant 1 : index
    %c0_6 = arith.constant 0 : index
    %c0_7 = arith.constant 0 : index
    %11 = vector.load %arg6[%c1, %c0_6, %c0_7] : memref<3x32x128xbf16, #tpu.memory_space<vmem>>, vector<1x32x128xbf16>
    %12 = vector.shape_cast %11 : vector<1x32x128xbf16> to vector<32x128xbf16>
    %cst_8 = arith.constant dense<0.000000e+00> : vector<16x128xf32>
    %13 = tpu.matmul %10, %12, %cst_8 {dimension_numbers = #tpu.dot_dimension_numbers<[1], [0], [0], [1], [0, 0, 1, 1], [], []>} : vector<16x32xbf16>, vector<32x128xbf16>, vector<16x128xf32> -> vector<16x128xf32>
    %14 = arith.addf %8, %13 : vector<16x128xf32>
    %15 = vector.extract_strided_slice %1 {offsets = [2, 0], sizes = [16, 32], strides = [1, 1]} : vector<18x32xf32> to vector<16x32xf32>
    %16 = arith.truncf %15 : vector<16x32xf32> to vector<16x32xbf16>
    %c2 = arith.constant 2 : index
    %c0_9 = arith.constant 0 : index
    %c0_10 = arith.constant 0 : index
    %17 = vector.load %arg6[%c2, %c0_9, %c0_10] : memref<3x32x128xbf16, #tpu.memory_space<vmem>>, vector<1x32x128xbf16>
    %18 = vector.shape_cast %17 : vector<1x32x128xbf16> to vector<32x128xbf16>
    %cst_11 = arith.constant dense<0.000000e+00> : vector<16x128xf32>
    %19 = tpu.matmul %16, %18, %cst_11 {dimension_numbers = #tpu.dot_dimension_numbers<[1], [0], [0], [1], [0, 0, 1, 1], [], []>} : vector<16x32xbf16>, vector<32x128xbf16>, vector<16x128xf32> -> vector<16x128xf32>
    %20 = arith.addf %14, %19 : vector<16x128xf32>
    %c0_12 = arith.constant 0 : index
    %c0_13 = arith.constant 0 : index
    %21 = vector.load %arg7[%c0_12, %c0_13] : memref<1x128xf32, #tpu.memory_space<vmem>>, vector<1x128xf32>
    %22 = vector.broadcast %21 : vector<1x128xf32> to vector<16x128xf32>
    %23 = arith.addf %20, %22 : vector<16x128xf32>
    %cst_14 = arith.constant 0.000000e+00 : f32
    %24 = vector.broadcast %cst_14 : f32 to vector<16x128xf32>
    %25 = arith.maximumf %23, %24 : vector<16x128xf32>
    %cst_15 = arith.constant dense<0xFF800000> : vector<128xf32>
    %26 = vector.multi_reduction <maximumf>, %25, %cst_15 [0] : vector<16x128xf32> to vector<128xf32>
    %27 = vector.shape_cast %26 : vector<128xf32> to vector<1x128xf32>
    %28 = arith.truncf %27 : vector<1x128xf32> to vector<1x128xbf16>
    %c0_16 = arith.constant 0 : index
    %c0_17 = arith.constant 0 : index
    %29 = vector.load %arg8[%c0_16, %c0_17] : memref<128x128xbf16, #tpu.memory_space<vmem>>, vector<128x128xbf16>
    %cst_18 = arith.constant dense<0.000000e+00> : vector<1x128xf32>
    %30 = tpu.matmul %28, %29, %cst_18 {dimension_numbers = #tpu.dot_dimension_numbers<[1], [0], [0], [1], [0, 0, 1, 1], [], []>} : vector<1x128xbf16>, vector<128x128xbf16>, vector<1x128xf32> -> vector<1x128xf32>
    %c0_19 = arith.constant 0 : index
    %c0_20 = arith.constant 0 : index
    %31 = vector.load %arg9[%c0_19, %c0_20] : memref<1x128xf32, #tpu.memory_space<vmem>>, vector<1x128xf32>
    %32 = arith.addf %30, %31 : vector<1x128xf32>
    %cst_21 = arith.constant 0.000000e+00 : f32
    %33 = vector.broadcast %cst_21 : f32 to vector<1x128xf32>
    %34 = arith.maximumf %32, %33 : vector<1x128xf32>
    %cst_22 = arith.constant 0.000000e+00 : f32
    %35 = vector.broadcast %cst_22 : f32 to vector<1x128xf32>
    %36 = tpu.concatenate %35, %25, %35 in 0 : vector<1x128xf32>, vector<16x128xf32>, vector<1x128xf32> -> vector<18x128xf32>
    %cst_23 = arith.constant 0.000000e+00 : f32
    %37 = vector.broadcast %cst_23 : f32 to vector<16x128xf32>
    %38 = vector.extract_strided_slice %36 {offsets = [0, 0], sizes = [16, 128], strides = [1, 1]} : vector<18x128xf32> to vector<16x128xf32>
    %39 = arith.truncf %38 : vector<16x128xf32> to vector<16x128xbf16>
    %c0_24 = arith.constant 0 : index
    %c0_25 = arith.constant 0 : index
    %c0_26 = arith.constant 0 : index
    %40 = vector.load %arg10[%c0_24, %c0_25, %c0_26] : memref<3x128x128xbf16, #tpu.memory_space<vmem>>, vector<1x128x128xbf16>
    %41 = vector.shape_cast %40 : vector<1x128x128xbf16> to vector<128x128xbf16>
    %cst_27 = arith.constant dense<0.000000e+00> : vector<16x128xf32>
    %42 = tpu.matmul %39, %41, %cst_27 {dimension_numbers = #tpu.dot_dimension_numbers<[1], [0], [0], [1], [0, 0, 1, 1], [], []>} : vector<16x128xbf16>, vector<128x128xbf16>, vector<16x128xf32> -> vector<16x128xf32>
    %43 = arith.addf %37, %42 : vector<16x128xf32>
    %44 = vector.extract_strided_slice %36 {offsets = [1, 0], sizes = [16, 128], strides = [1, 1]} : vector<18x128xf32> to vector<16x128xf32>
    %45 = arith.truncf %44 : vector<16x128xf32> to vector<16x128xbf16>
    %c1_28 = arith.constant 1 : index
    %c0_29 = arith.constant 0 : index
    %c0_30 = arith.constant 0 : index
    %46 = vector.load %arg10[%c1_28, %c0_29, %c0_30] : memref<3x128x128xbf16, #tpu.memory_space<vmem>>, vector<1x128x128xbf16>
    %47 = vector.shape_cast %46 : vector<1x128x128xbf16> to vector<128x128xbf16>
    %cst_31 = arith.constant dense<0.000000e+00> : vector<16x128xf32>
    %48 = tpu.matmul %45, %47, %cst_31 {dimension_numbers = #tpu.dot_dimension_numbers<[1], [0], [0], [1], [0, 0, 1, 1], [], []>} : vector<16x128xbf16>, vector<128x128xbf16>, vector<16x128xf32> -> vector<16x128xf32>
    %49 = arith.addf %43, %48 : vector<16x128xf32>
    %50 = vector.extract_strided_slice %36 {offsets = [2, 0], sizes = [16, 128], strides = [1, 1]} : vector<18x128xf32> to vector<16x128xf32>
    %51 = arith.truncf %50 : vector<16x128xf32> to vector<16x128xbf16>
    %c2_32 = arith.constant 2 : index
    %c0_33 = arith.constant 0 : index
    %c0_34 = arith.constant 0 : index
    %52 = vector.load %arg10[%c2_32, %c0_33, %c0_34] : memref<3x128x128xbf16, #tpu.memory_space<vmem>>, vector<1x128x128xbf16>
    %53 = vector.shape_cast %52 : vector<1x128x128xbf16> to vector<128x128xbf16>
    %cst_35 = arith.constant dense<0.000000e+00> : vector<16x128xf32>
    %54 = tpu.matmul %51, %53, %cst_35 {dimension_numbers = #tpu.dot_dimension_numbers<[1], [0], [0], [1], [0, 0, 1, 1], [], []>} : vector<16x128xbf16>, vector<128x128xbf16>, vector<16x128xf32> -> vector<16x128xf32>
    %55 = arith.addf %49, %54 : vector<16x128xf32>
    %c0_36 = arith.constant 0 : index
    %c0_37 = arith.constant 0 : index
    %56 = vector.load %arg11[%c0_36, %c0_37] : memref<1x128xf32, #tpu.memory_space<vmem>>, vector<1x128xf32>
    %57 = vector.broadcast %56 : vector<1x128xf32> to vector<16x128xf32>
    %58 = arith.addf %55, %57 : vector<16x128xf32>
    %cst_38 = arith.constant 0.000000e+00 : f32
    %59 = vector.broadcast %cst_38 : f32 to vector<16x128xf32>
    %60 = arith.maximumf %58, %59 : vector<16x128xf32>
    %cst_39 = arith.constant 0.000000e+00 : f32
    %61 = vector.broadcast %cst_39 : f32 to vector<1x128xf32>
    %62 = tpu.concatenate %61, %60, %61 in 0 : vector<1x128xf32>, vector<16x128xf32>, vector<1x128xf32> -> vector<18x128xf32>
    %cst_40 = arith.constant 0.000000e+00 : f32
    %63 = vector.broadcast %cst_40 : f32 to vector<16x128xf32>
    %64 = vector.extract_strided_slice %62 {offsets = [0, 0], sizes = [16, 128], strides = [1, 1]} : vector<18x128xf32> to vector<16x128xf32>
    %65 = arith.truncf %64 : vector<16x128xf32> to vector<16x128xbf16>
    %c0_41 = arith.constant 0 : index
    %c0_42 = arith.constant 0 : index
    %c0_43 = arith.constant 0 : index
    %66 = vector.load %arg12[%c0_41, %c0_42, %c0_43] : memref<3x128x128xbf16, #tpu.memory_space<vmem>>, vector<1x128x128xbf16>
    %67 = vector.shape_cast %66 : vector<1x128x128xbf16> to vector<128x128xbf16>
    %cst_44 = arith.constant dense<0.000000e+00> : vector<16x128xf32>
    %68 = tpu.matmul %65, %67, %cst_44 {dimension_numbers = #tpu.dot_dimension_numbers<[1], [0], [0], [1], [0, 0, 1, 1], [], []>} : vector<16x128xbf16>, vector<128x128xbf16>, vector<16x128xf32> -> vector<16x128xf32>
    %69 = arith.addf %63, %68 : vector<16x128xf32>
    %70 = vector.extract_strided_slice %62 {offsets = [1, 0], sizes = [16, 128], strides = [1, 1]} : vector<18x128xf32> to vector<16x128xf32>
    %71 = arith.truncf %70 : vector<16x128xf32> to vector<16x128xbf16>
    %c1_45 = arith.constant 1 : index
    %c0_46 = arith.constant 0 : index
    %c0_47 = arith.constant 0 : index
    %72 = vector.load %arg12[%c1_45, %c0_46, %c0_47] : memref<3x128x128xbf16, #tpu.memory_space<vmem>>, vector<1x128x128xbf16>
    %73 = vector.shape_cast %72 : vector<1x128x128xbf16> to vector<128x128xbf16>
    %cst_48 = arith.constant dense<0.000000e+00> : vector<16x128xf32>
    %74 = tpu.matmul %71, %73, %cst_48 {dimension_numbers = #tpu.dot_dimension_numbers<[1], [0], [0], [1], [0, 0, 1, 1], [], []>} : vector<16x128xbf16>, vector<128x128xbf16>, vector<16x128xf32> -> vector<16x128xf32>
    %75 = arith.addf %69, %74 : vector<16x128xf32>
    %76 = vector.extract_strided_slice %62 {offsets = [2, 0], sizes = [16, 128], strides = [1, 1]} : vector<18x128xf32> to vector<16x128xf32>
    %77 = arith.truncf %76 : vector<16x128xf32> to vector<16x128xbf16>
    %c2_49 = arith.constant 2 : index
    %c0_50 = arith.constant 0 : index
    %c0_51 = arith.constant 0 : index
    %78 = vector.load %arg12[%c2_49, %c0_50, %c0_51] : memref<3x128x128xbf16, #tpu.memory_space<vmem>>, vector<1x128x128xbf16>
    %79 = vector.shape_cast %78 : vector<1x128x128xbf16> to vector<128x128xbf16>
    %cst_52 = arith.constant dense<0.000000e+00> : vector<16x128xf32>
    %80 = tpu.matmul %77, %79, %cst_52 {dimension_numbers = #tpu.dot_dimension_numbers<[1], [0], [0], [1], [0, 0, 1, 1], [], []>} : vector<16x128xbf16>, vector<128x128xbf16>, vector<16x128xf32> -> vector<16x128xf32>
    %81 = arith.addf %75, %80 : vector<16x128xf32>
    %c0_53 = arith.constant 0 : index
    %c0_54 = arith.constant 0 : index
    %82 = vector.load %arg13[%c0_53, %c0_54] : memref<1x128xf32, #tpu.memory_space<vmem>>, vector<1x128xf32>
    %83 = vector.broadcast %82 : vector<1x128xf32> to vector<16x128xf32>
    %84 = arith.addf %81, %83 : vector<16x128xf32>
    %cst_55 = arith.constant 0.000000e+00 : f32
    %85 = vector.broadcast %cst_55 : f32 to vector<16x128xf32>
    %86 = arith.maximumf %84, %85 : vector<16x128xf32>
    %87 = arith.truncf %34 : vector<1x128xf32> to vector<1x128xbf16>
    %c0_56 = arith.constant 0 : index
    %c0_57 = arith.constant 0 : index
    %c0_58 = arith.constant 0 : index
    %88 = vector.load %arg4[%c0_56, %c0_57, %c0_58] : memref<1x16x128xbf16, #tpu.memory_space<vmem>>, vector<1x16x128xbf16>
    %89 = vector.shape_cast %88 : vector<1x16x128xbf16> to vector<16x128xbf16>
    %90 = vector.broadcast %87 : vector<1x128xbf16> to vector<16x128xbf16>
    %91 = arith.mulf %90, %89 : vector<16x128xbf16>
    %92 = arith.truncf %86 : vector<16x128xf32> to vector<16x128xbf16>
    %c0_59 = arith.constant 0 : index
    %c0_60 = arith.constant 0 : index
    %c0_61 = arith.constant 0 : index
    %93 = vector.load %arg5[%c0_59, %c0_60, %c0_61] : memref<1x16x128xbf16, #tpu.memory_space<vmem>>, vector<1x16x128xbf16>
    %94 = vector.shape_cast %93 : vector<1x16x128xbf16> to vector<16x128xbf16>
    %95 = arith.mulf %92, %94 : vector<16x128xbf16>
    %c0_62 = arith.constant 0 : index
    %c0_63 = arith.constant 0 : index
    %96 = vector.load %arg14[%c0_62, %c0_63] : memref<128x128xbf16, #tpu.memory_space<vmem>>, vector<128x128xbf16>
    %cst_64 = arith.constant dense<0.000000e+00> : vector<16x128xf32>
    %97 = tpu.matmul %91, %96, %cst_64 {dimension_numbers = #tpu.dot_dimension_numbers<[1], [0], [0], [1], [0, 0, 1, 1], [], []>} : vector<16x128xbf16>, vector<128x128xbf16>, vector<16x128xf32> -> vector<16x128xf32>
    %c0_65 = arith.constant 0 : index
    %c0_66 = arith.constant 0 : index
    %98 = vector.load %arg15[%c0_65, %c0_66] : memref<128x128xbf16, #tpu.memory_space<vmem>>, vector<128x128xbf16>
    %cst_67 = arith.constant dense<0.000000e+00> : vector<16x128xf32>
    %99 = tpu.matmul %95, %98, %cst_67 {dimension_numbers = #tpu.dot_dimension_numbers<[1], [0], [0], [1], [0, 0, 1, 1], [], []>} : vector<16x128xbf16>, vector<128x128xbf16>, vector<16x128xf32> -> vector<16x128xf32>
    %100 = arith.addf %97, %99 : vector<16x128xf32>
    %c0_68 = arith.constant 0 : index
    %c0_69 = arith.constant 0 : index
    %101 = vector.load %arg16[%c0_68, %c0_69] : memref<1x128xf32, #tpu.memory_space<vmem>>, vector<1x128xf32>
    %102 = vector.broadcast %101 : vector<1x128xf32> to vector<16x128xf32>
    %103 = arith.addf %100, %102 : vector<16x128xf32>
    %cst_70 = arith.constant 0.000000e+00 : f32
    %104 = vector.broadcast %cst_70 : f32 to vector<16x128xf32>
    %105 = arith.maximumf %103, %104 : vector<16x128xf32>
    %c0_71 = arith.constant 0 : index
    %c0_72 = arith.constant 0 : index
    %106 = vector.load %arg17[%c0_71, %c0_72] : memref<1x128xf32, #tpu.memory_space<vmem>>, vector<1x128xf32>
    %107 = vector.broadcast %106 : vector<1x128xf32> to vector<16x128xf32>
    %108 = arith.mulf %105, %107 : vector<16x128xf32>
    %cst_73 = arith.constant dense<0.000000e+00> : vector<16xf32>
    %109 = vector.multi_reduction <add>, %108, %cst_73 [1] : vector<16x128xf32> to vector<16xf32>
    %110 = vector.shape_cast %109 : vector<16xf32> to vector<16x1xf32>
    %c0_74 = arith.constant 0 : index
    %c0_75 = arith.constant 0 : index
    %111 = vector.load %arg18[%c0_74, %c0_75] : memref<1x1xf32, #tpu.memory_space<vmem>>, vector<1x1xf32>
    %112 = vector.broadcast %111 : vector<1x1xf32> to vector<16x1xf32>
    %113 = arith.addf %110, %112 : vector<16x1xf32>
    %c0_76 = arith.constant 0 : index
    %c0_77 = arith.constant 0 : index
    %c0_78 = arith.constant 0 : index
    %114 = vector.load %arg3[%c0_76, %c0_77, %c0_78] : memref<1x16x10xf32, #tpu.memory_space<vmem>>, vector<1x16x10xf32>
    %115 = vector.shape_cast %114 : vector<1x16x10xf32> to vector<16x10xf32>
    %116 = vector.broadcast %113 : vector<16x1xf32> to vector<16x10xf32>
    %117 = arith.addf %115, %116 : vector<16x10xf32>
    %cst_79 = arith.constant 2.000000e+00 : f32
    %118 = vector.broadcast %cst_79 : f32 to vector<16x10xf32>
    %119 = arith.mulf %117, %118 : vector<16x10xf32>
    %cst_80 = arith.constant dense<0xFF800000> : vector<10xf32>
    %120 = vector.multi_reduction <maximumf>, %119, %cst_80 [0] : vector<16x10xf32> to vector<10xf32>
    %121 = vector.shape_cast %120 : vector<10xf32> to vector<1x10xf32>
    %122 = vector.broadcast %121 : vector<1x10xf32> to vector<16x10xf32>
    %123 = arith.subf %119, %122 : vector<16x10xf32>
    %124 = math.exp %123 : vector<16x10xf32>
    %cst_81 = arith.constant dense<0.000000e+00> : vector<10xf32>
    %125 = vector.multi_reduction <add>, %124, %cst_81 [0] : vector<16x10xf32> to vector<10xf32>
    %126 = vector.shape_cast %125 : vector<10xf32> to vector<1x10xf32>
    %127 = tpu.reciprocal %126 {approx = true} : vector<1x10xf32> -> vector<1x10xf32>
    %128 = vector.broadcast %127 : vector<1x10xf32> to vector<16x10xf32>
    %129 = arith.mulf %124, %128 : vector<16x10xf32>
    %cst_82 = arith.constant dense<0xFF800000> : vector<16xf32>
    %130 = vector.multi_reduction <maximumf>, %129, %cst_82 [1] : vector<16x10xf32> to vector<16xf32>
    %131 = vector.shape_cast %130 : vector<16xf32> to vector<16x1xf32>
    %c0_83 = arith.constant 0 : index
    %c0_84 = arith.constant 0 : index
    %c0_85 = arith.constant 0 : index
    %132 = vector.load %arg2[%c0_83, %c0_84, %c0_85] : memref<1x16x32xf32, #tpu.memory_space<vmem>>, vector<1x16x32xf32>
    %133 = vector.shape_cast %132 : vector<1x16x32xf32> to vector<16x32xf32>
    %134 = vector.broadcast %131 : vector<16x1xf32> to vector<16x32xf32>
    %135 = arith.mulf %133, %134 : vector<16x32xf32>
    %cst_86 = arith.constant dense<0.000000e+00> : vector<32xf32>
    %136 = vector.multi_reduction <add>, %135, %cst_86 [0] : vector<16x32xf32> to vector<32xf32>
    %137 = vector.shape_cast %136 : vector<32xf32> to vector<1x32xf32>
    %cst_87 = arith.constant 1.000000e-01 : f32
    %138 = vector.broadcast %cst_87 : f32 to vector<1x32xf32>
    %139 = arith.mulf %137, %138 : vector<1x32xf32>
    %140 = arith.truncf %139 : vector<1x32xf32> to vector<1x32xbf16>
    %c0_88 = arith.constant 0 : index
    %c0_89 = arith.constant 0 : index
    %141 = vector.load %arg19[%c0_88, %c0_89] : memref<32x32xbf16, #tpu.memory_space<vmem>>, vector<32x32xbf16>
    %cst_90 = arith.constant dense<0.000000e+00> : vector<1x32xf32>
    %142 = tpu.matmul %140, %141, %cst_90 {dimension_numbers = #tpu.dot_dimension_numbers<[1], [0], [0], [1], [0, 0, 1, 1], [], []>} : vector<1x32xbf16>, vector<32x32xbf16>, vector<1x32xf32> -> vector<1x32xf32>
    %c0_91 = arith.constant 0 : index
    %c0_92 = arith.constant 0 : index
    %143 = vector.load %arg20[%c0_91, %c0_92] : memref<1x32xf32, #tpu.memory_space<vmem>>, vector<1x32xf32>
    %144 = arith.addf %142, %143 : vector<1x32xf32>
    %cst_93 = arith.constant 0.000000e+00 : f32
    %145 = vector.broadcast %cst_93 : f32 to vector<1x32xf32>
    %146 = arith.maximumf %144, %145 : vector<1x32xf32>
    %c0_94 = arith.constant 0 : index
    %c0_95 = arith.constant 0 : index
    %147 = vector.load %arg21[%c0_94, %c0_95] : memref<32x2xf32, #tpu.memory_space<vmem>>, vector<32x2xf32>
    %cst_96 = arith.constant dense<0.000000e+00> : vector<1x2xf32>
    %148 = tpu.matmul %146, %147, %cst_96 {dimension_numbers = #tpu.dot_dimension_numbers<[1], [0], [0], [1], [0, 0, 1, 1], [], []>} : vector<1x32xf32>, vector<32x2xf32>, vector<1x2xf32> -> vector<1x2xf32>
    %c0_97 = arith.constant 0 : index
    %c0_98 = arith.constant 0 : index
    %149 = vector.load %arg22[%c0_97, %c0_98] : memref<1x2xf32, #tpu.memory_space<vmem>>, vector<1x2xf32>
    %150 = arith.addf %148, %149 : vector<1x2xf32>
    %c0_99 = arith.constant 0 : index
    %c0_100 = arith.constant 0 : index
    %c0_101 = arith.constant 0 : index
    %151 = vector.load %arg23[%c0_99, %c0_100, %c0_101] : memref<1x1x2xf32, #tpu.memory_space<vmem>>, vector<1x1x2xf32>
    %152 = vector.shape_cast %151 : vector<1x1x2xf32> to vector<1x2xf32>
    %153 = vector.shape_cast %150 : vector<1x2xf32> to vector<1x1x2xf32>
    tpu.vector_store %arg23[%c0_99, %c0_100, %c0_101], %153 {strides = array<i32>} : memref<1x1x2xf32, #tpu.memory_space<vmem>>, vector<1x1x2xf32>,
    return
  }
  func.func @transform_0(%arg0: i32) -> (i32, i32, i32) {
    %c0_i32 = arith.constant 0 : i32
    %c0_i32_0 = arith.constant 0 : i32
    %c0_i32_1 = arith.constant 0 : i32
    return %arg0, %c0_i32, %c0_i32_0 : i32, i32, i32
  }
  func.func @transform_1(%arg0: i32) -> (i32, i32, i32) {
    %c0_i32 = arith.constant 0 : i32
    %c0_i32_0 = arith.constant 0 : i32
    %c0_i32_1 = arith.constant 0 : i32
    return %arg0, %c0_i32, %c0_i32_0 : i32, i32, i32
  }
  func.func @transform_2(%arg0: i32) -> (i32, i32, i32) {
    %c0_i32 = arith.constant 0 : i32
    %c0_i32_0 = arith.constant 0 : i32
    %c0_i32_1 = arith.constant 0 : i32
    return %arg0, %c0_i32, %c0_i32_0 : i32, i32, i32
  }
  func.func @transform_3(%arg0: i32) -> (i32, i32, i32) {
    %c0_i32 = arith.constant 0 : i32
    %c0_i32_0 = arith.constant 0 : i32
    %c0_i32_1 = arith.constant 0 : i32
    return %arg0, %c0_i32, %c0_i32_0 : i32, i32, i32
  }
  func.func @transform_4(%arg0: i32) -> (i32, i32, i32) {
    %c0_i32 = arith.constant 0 : i32
    %c0_i32_0 = arith.constant 0 : i32
    %c0_i32_1 = arith.constant 0 : i32
    return %arg0, %c0_i32, %c0_i32_0 : i32, i32, i32
  }
  func.func @transform_5(%arg0: i32) -> (i32, i32, i32) {
    %c0_i32 = arith.constant 0 : i32
    %c0_i32_0 = arith.constant 0 : i32
    %c0_i32_1 = arith.constant 0 : i32
    %c0_i32_2 = arith.constant 0 : i32
    return %c0_i32, %c0_i32_0, %c0_i32_1 : i32, i32, i32
  }
  func.func @transform_6(%arg0: i32) -> (i32, i32) {
    %c0_i32 = arith.constant 0 : i32
    %c0_i32_0 = arith.constant 0 : i32
    %c0_i32_1 = arith.constant 0 : i32
    return %c0_i32, %c0_i32_0 : i32, i32
  }
  func.func @transform_7(%arg0: i32) -> (i32, i32) {
    %c0_i32 = arith.constant 0 : i32
    %c0_i32_0 = arith.constant 0 : i32
    %c0_i32_1 = arith.constant 0 : i32
    return %c0_i32, %c0_i32_0 : i32, i32
  }
  func.func @transform_8(%arg0: i32) -> (i32, i32) {
    %c0_i32 = arith.constant 0 : i32
    %c0_i32_0 = arith.constant 0 : i32
    %c0_i32_1 = arith.constant 0 : i32
    return %c0_i32, %c0_i32_0 : i32, i32
  }
  func.func @transform_9(%arg0: i32) -> (i32, i32, i32) {
    %c0_i32 = arith.constant 0 : i32
    %c0_i32_0 = arith.constant 0 : i32
    %c0_i32_1 = arith.constant 0 : i32
    %c0_i32_2 = arith.constant 0 : i32
    return %c0_i32, %c0_i32_0, %c0_i32_1 : i32, i32, i32
  }
  func.func @transform_10(%arg0: i32) -> (i32, i32) {
    %c0_i32 = arith.constant 0 : i32
    %c0_i32_0 = arith.constant 0 : i32
    %c0_i32_1 = arith.constant 0 : i32
    return %c0_i32, %c0_i32_0 : i32, i32
  }
  func.func @transform_11(%arg0: i32) -> (i32, i32, i32) {
    %c0_i32 = arith.constant 0 : i32
    %c0_i32_0 = arith.constant 0 : i32
    %c0_i32_1 = arith.constant 0 : i32
    %c0_i32_2 = arith.constant 0 : i32
    return %c0_i32, %c0_i32_0, %c0_i32_1 : i32, i32, i32
  }
  func.func @transform_12(%arg0: i32) -> (i32, i32) {
    %c0_i32 = arith.constant 0 : i32
    %c0_i32_0 = arith.constant 0 : i32
    %c0_i32_1 = arith.constant 0 : i32
    return %c0_i32, %c0_i32_0 : i32, i32
  }
  func.func @transform_13(%arg0: i32) -> (i32, i32) {
    %c0_i32 = arith.constant 0 : i32
    %c0_i32_0 = arith.constant 0 : i32
    %c0_i32_1 = arith.constant 0 : i32
    return %c0_i32, %c0_i32_0 : i32, i32
  }
  func.func @transform_14(%arg0: i32) -> (i32, i32) {
    %c0_i32 = arith.constant 0 : i32
    %c0_i32_0 = arith.constant 0 : i32
    %c0_i32_1 = arith.constant 0 : i32
    return %c0_i32, %c0_i32_0 : i32, i32
  }
  func.func @transform_15(%arg0: i32) -> (i32, i32) {
    %c0_i32 = arith.constant 0 : i32
    %c0_i32_0 = arith.constant 0 : i32
    %c0_i32_1 = arith.constant 0 : i32
    return %c0_i32, %c0_i32_0 : i32, i32
  }
  func.func @transform_16(%arg0: i32) -> (i32, i32) {
    %c0_i32 = arith.constant 0 : i32
    %c0_i32_0 = arith.constant 0 : i32
    %c0_i32_1 = arith.constant 0 : i32
    return %c0_i32, %c0_i32_0 : i32, i32
  }
  func.func @transform_17(%arg0: i32) -> (i32, i32) {
    %c0_i32 = arith.constant 0 : i32
    %c0_i32_0 = arith.constant 0 : i32
    %c0_i32_1 = arith.constant 0 : i32
    return %c0_i32, %c0_i32_0 : i32, i32
  }
  func.func @transform_18(%arg0: i32) -> (i32, i32) {
    %c0_i32 = arith.constant 0 : i32
    %c0_i32_0 = arith.constant 0 : i32
    %c0_i32_1 = arith.constant 0 : i32
    return %c0_i32, %c0_i32_0 : i32, i32
  }
  func.func @transform_19(%arg0: i32) -> (i32, i32) {
    %c0_i32 = arith.constant 0 : i32
    %c0_i32_0 = arith.constant 0 : i32
    %c0_i32_1 = arith.constant 0 : i32
    return %c0_i32, %c0_i32_0 : i32, i32
  }
  func.func @transform_20(%arg0: i32) -> (i32, i32) {
    %c0_i32 = arith.constant 0 : i32
    %c0_i32_0 = arith.constant 0 : i32
    %c0_i32_1 = arith.constant 0 : i32
    return %c0_i32, %c0_i32_0 : i32, i32
  }
  func.func @transform_21(%arg0: i32) -> (i32, i32) {
    %c0_i32 = arith.constant 0 : i32
    %c0_i32_0 = arith.constant 0 : i32
    %c0_i32_1 = arith.constant 0 : i32
    return %c0_i32, %c0_i32_0 : i32, i32
  }
  func.func @transform_22(%arg0: i32) -> (i32, i32, i32) {
    %c0_i32 = arith.constant 0 : i32
    %c0_i32_0 = arith.constant 0 : i32
    %c0_i32_1 = arith.constant 0 : i32
    return %arg0, %c0_i32, %c0_i32_0 : i32, i32, i32
  }
}

</mosaic_0001>

<bundles_post_ra>
// kernel: l2x_forward.3
= control target key start
LH: loop header
LB: loop body
LE: loop exit
PB: predicated region body
PF: predicated region fallthrough
CT: control target
= control target key end

     0   :  { %s3815_s0 = inlined_call_operand.vmem [shape: f32[2,18,32], index: 0, kind: input, shape index: {}]   ;;  %s3816_s1 = inlined_call_operand.vmem [shape: f32[2,16,32], index: 1, kind: input, shape index: {}]   ;;  %s3817_s2 = inlined_call_operand.vmem [shape: f32[2,16,10], index: 2, kind: input, shape index: {}]   ;;  %s3818_s3 = inlined_call_operand.vmem [shape: bf16[2,16,128], index: 3, kind: input, shape index: {}]   ;;  %s3819_s4 = inlined_call_operand.vmem [shape: bf16[2,16,128], index: 4, kind: input, shape index: {}]   ;;  %s3820_s5 = inlined_call_operand.vmem [shape: bf16[3,32,128], index: 5, kind: input, shape index: {}]   ;;  %s3821_s6 = inlined_call_operand.vmem [shape: f32[1,128], index: 6, kind: input, shape index: {}]   ;;  %s3822_s7 = inlined_call_operand.vmem [shape: bf16[128,128], index: 7, kind: input, shape index: {}]   ;;  %s3823_s8 = inlined_call_operand.vmem [shape: f32[1,128], index: 8, kind: input, shape index: {}]   ;;  %s3824_s9 = inlined_call_operand.vmem [shape: bf16[3,128,128], index: 9, kind: input, shape index: {}]   ;;  %s3825_s10 = inlined_call_operand.vmem [shape: f32[1,128], index: 10, kind: input, shape index: {}]   ;;  %s3826_s11 = inlined_call_operand.vmem [shape: bf16[3,128,128], index: 11, kind: input, shape index: {}]   ;;  %s3827_s12 = inlined_call_operand.vmem [shape: f32[1,128], index: 12, kind: input, shape index: {}]   ;;  %s3828_s13 = inlined_call_operand.vmem [shape: bf16[128,128], index: 13, kind: input, shape index: {}]   ;;  %s3829_s14 = inlined_call_operand.vmem [shape: bf16[128,128], index: 14, kind: input, shape index: {}]   ;;  %s3830_s15 = inlined_call_operand.vmem [shape: f32[1,128], index: 15, kind: input, shape index: {}]   ;;  %s3831_s16 = inlined_call_operand.vmem [shape: f32[1,128], index: 16, kind: input, shape index: {}]   ;;  %s3832_s17 = inlined_call_operand.<no memory space> [shape: f32[1,1], index: 17, kind: input, shape index: {}]   ;;  %s3833_s18 = inlined_call_operand.vmem [shape: bf16[32,32], index: 18, kind: input, shape index: {}]   ;;  %s3834_s19 = inlined_call_operand.vmem [shape: f32[1,32], index: 19, kind: input, shape index: {}]   ;;  %s3835_s20 = inlined_call_operand.vmem [shape: f32[32,2], index: 20, kind: input, shape index: {}]   ;;  %s3836_s21 = inlined_call_operand.vmem [shape: f32[1,2], index: 21, kind: input, shape index: {}]   ;;  %s3837_s22 = inlined_call_operand.hbm [shape: f32[2,1,2], index: 22, kind: output, shape index: {}]  }
   0x1   :  { %3843 = sst [smem:[#allocation9_spill]] %s3815_s0  ;;  %v27_v0 = vstv %s3832_s17 }
   0x2   :  { %3844 = sst [smem:[#allocation10_spill]] %s3816_s1  ;;  %28 = vst [vmem:[#allocation2] sm:$0x1] %v27_v0 }
   0x3   :  { %3845 = sst [smem:[#allocation11_spill]] %s3817_s2 }
   0x4   :  { %3846 = sst [smem:[#allocation12_spill]] %s3818_s3 }
   0x5   :  { %3847 = sst [smem:[#allocation13_spill]] %s3819_s4 }
   0x6   :  { %3848 = sst [smem:[#allocation14_spill]] %s3820_s5 }
   0x7   :  { %3849 = sst [smem:[#allocation15_spill]] %s3821_s6 }
   0x8   :  { %3850 = sst [smem:[#allocation16_spill]] %s3822_s7 }
   0x9   :  { %3851 = sst [smem:[#allocation17_spill]] %s3824_s9 }
   0xa   :  { %29 = vsyncpa [#allocation4], 0 }
   0xb   :  { %31 = vsyncpa [#allocation4 + $0x1], 0  ;;  %s3245_s29 = smov 0   ;;  %s3247_s30 = smov 0  }
   0xc   :  { %s3249_s4 = smov 0   ;;  %s3251_s0 = smov 0  }
   0xd LB: > { %3852 = sst [smem:[#allocation6_spill]] %s3116_s4  ;;  %s3266_s17 = sadd.s32 4294967295, %s3120_s0   ;;  %s3120_s0 = sphi %s3251_s0, %s3868_s0   ;;  %s3116_s4 = sphi %s3249_s4, %s3870_s4   ;;  %s3112_s30 = sphi %s3247_s30, %s3872_s30   ;;  %s3108_s29 = sphi %s3245_s29, %s3871_s29  }
   0xe   : > { %s2412_s23 = sadd.s32 4294967294, %s3120_s0   ;;  %s3270_s1 = sadd.s32 1, %s3120_s0  }
   0xf   : > { %3853 = sst [smem:[#allocation7_spill]] %s3270_s1  ;;  %s531_s5 = sadd.s32 1, %s3116_s4 }
  0x10   : > { %s528_s24 = ssub.s32 %s3120_s0, %s3270_s1  ;;  %p541_p0 = scmp.ne.s32.totalorder %s3116_s4, %s3112_s30 }
  0x11   : > { %p529_p1 = scmp.eq.s32.totalorder %s528_s24, 0  ;;  %p542_p2 = scmp.eq.s32.totalorder %s3266_s17, 1 }
  0x12   : > { %p547_p3 = scmp.ne.s32.totalorder %s3112_s30, %s3108_s29  ;;  %p548_p4 = scmp.eq.s32.totalorder %s2412_s23, 1 }
  0x13   : > { %s3281_s6 = scalar_select %p529_p1, %s3116_s4, %s531_s5  }
  0x14   : > { %p3283_p5 = por %p542_p2, %p541_p0  ;;  %p3287_p6 = por %p548_p4, %p547_p3 }
  0x15   : > { %3854 = sst [smem:[#allocation8_spill]] %s3281_s6  ;;  %p2415_p7 = scmp.ge.s32.totalorder %s3120_s0, 1 }
  0x16   : > { %p657_p8 = scmp.lt.s32.totalorder %s3120_s0, 3 }
  0x18   : > { %p658_p9 = pnand %p2415_p7, %p657_p8 }
  0x19   : > { %s3857_s3 = sld [smem:[#allocation14_spill]] (!%p658_p9)  ;;  %p738_p10 = scmp.lt.s32.totalorder (!%p658_p9), %s3266_s17, 1 }
  0x1a   : > { %661 = sbr.rel (%p658_p9) target bundleno = 1872 (0x750), region = 108  ;;  %s3858_s28 = sld [smem:[#allocation9_spill]] (!%p658_p9) }
  0x1b   : > { %s3859_s9 = sld [smem:[#allocation17_spill]] (!%p658_p9) }
  0x1c   : > { %s3860_s7 = sld [smem:[#allocation16_spill]] (!%p658_p9) }
  0x1d   : > { %s3861_s2 = sld [smem:[#allocation15_spill]] (!%p658_p9) }
  0x1e   : > { %s3867_s4 = sld [smem:[#allocation10_spill]] (!%p658_p9) }
  0x1f   : > { %v2972_v1 = vld [vmem:[%s3857_s3 + $0x18] sm:$0xff]   ;;  %v3122_v2 = vmov 0.0   ;;  %v2973_v3 = vld [vmem:[%s3857_s3 + $0x10] sm:$0xff]   ;;  %vm3123_vm0 = vmmov 0   ;;  %s3308_s5 = scalar_select %p738_p10, %s3266_s17, 1  ;;  %vm803_vm2 = vcmask 261120  }
  0x20   : > { %2703 = vmatprep.subr.bf16.mxu0 %v3122_v2  ;;  %2727 = vmatprep.subr.bf16.mxu1 %v3122_v2  ;;  %vm778_vm1 = vsmask.f32 7424  ;;  %v2974_v16 = vld [vmem:[%s3857_s3 + $0x8] sm:$0xff]   ;;  %v2975_v19 = vld [vmem:[%s3857_s3] sm:$0xff]   ;;  %vm910_vm3 = vcmask 1046528   ;;  %vm1099_vm4 = vcmask 1040384  }
  0x21   : > { %2704 = vmatpush3.bf16.msra.mxu0 %v2972_v1  ;;  %2707 = vmatprep.mubr.msk.bf16.mxu0 %vm3123_vm0, %v3122_v2  ;;  %s2926_s24 = smul.u32 24, %s3308_s5  ;;  %v2976_v20 = vld [vmem:[%s3857_s3 + $0x28] sm:$0xff]   ;;  %v2977_v21 = vld [vmem:[%s3857_s3 + $0x20] sm:$0xff]   ;;  %v2978_v23 = vld [vmem:[%s3859_s9 + $0x78] sm:$0xff]   ;;  %vm3124_vm6 = vmmov 1   ;;  %s2603_s27 = sshll.u32 %s3308_s5, 3 }
  0x22   : > { %2705 = vmatprep.subr.bf16.mxu0 %v3122_v2  ;;  %2743 = vmatprep.mubr.msk.bf16.mxu1 %vm3123_vm0, %v3122_v2  ;;  %v2979_v24 = vld [vmem:[%s3860_s7 + $0x38] sm:$0xff]   ;;  %v2980_v25 = vld [vmem:[%s3859_s9 + $0x70] sm:$0xff]   ;;  %v2982_v27 = vld [vmem:[%s3859_s9 + $0x68] sm:$0xff]   ;;  %s3864_s3 = sld [smem:[#allocation12_spill]]  ;;  %vm2106_vm8 = vcmask 80896   ;;  %vm2294_vm9 = vcmask 8192  }
  0x23   : > { %s742_s23 = scalar_lea.vmem %s3858_s28, %s2926_s24  ;;  %2728 = vmatpush3.bf16.msra.mxu1 %v2979_v24  ;;  %v2981_v26 = vld [vmem:[%s3860_s7 + $0x30] sm:$0xff]   ;;  %v2983_v28 = vld [vmem:[%s3860_s7 + $0x28] sm:$0xff]   ;;  %v2984_v29 = vld [vmem:[%s3859_s9 + $0x60] sm:$0xff]  }
  0x24   : > { %v764_v4 = vld [vmem:[%s742_s23] sm:$0xff]  ;;  %v765_v5 = vld [vmem:[%s742_s23 + $0x8] sm:$0xff]  ;;  %v766_v6 = vld [vmem:[%s742_s23 + $0x10] sm:$0x3]  ;;  %2729 = vmatprep.subr.bf16.mxu1 %v3122_v2 }
  0x25   : > { %2706 = vmatpush3.bf16.msra.mxu0 %v2973_v3  ;;  %v767_v7 = vpack.c.bf16 %v765_v5, %v764_v4  ;;  %v772_v8 = vpack.c.bf16 %v766_v6, %v766_v6  ;;  %v2985_v30 = vld [vmem:[%s3860_s7 + $0x20] sm:$0xff]   ;;  %v2986_v31 = vld [vmem:[%s3859_s9 + $0x58] sm:$0xff]   ;;  %v2988_v33 = vld [vmem:[%s3859_s9 + $0x50] sm:$0xff]  }
  0x26   : > { %2711 = vmatprep.subr.bf16.mxu0 %v3122_v2  ;;  %v2987_v32 = vld [vmem:[%s3860_s7 + $0x18] sm:$0xff]   ;;  %v2989_v34 = vld [vmem:[%s3860_s7 + $0x10] sm:$0xff]   ;;  %v2990_v35 = vld [vmem:[%s3859_s9 + $0x48] sm:$0xff]  }
  0x27   : > { %v780_v9 = vshrl.u32 %v767_v7, 16  ;;  %v782_v10 = vshll.u32 %v767_v7, 16  ;;  %v787_v11 = vshll.u32 %v772_v8, 16  ;;  %v911_v12 = vrot.slane %v767_v7, 1  ;;  %2730 = vmatpush3.bf16.msra.mxu1 %v2981_v26  ;;  %v2991_v36 = vld [vmem:[%s3860_s7 + $0x8] sm:$0xff]   ;;  %v2992_v37 = vld [vmem:[%s3859_s9 + $0x40] sm:$0xff]   ;;  %vm2483_vm5 = vmneg %vm1099_vm4 }
  0x28   : > { %v912_v13 = vrot.slane %v772_v8, 1  ;;  %2731 = vmatprep.subr.bf16.mxu1 %v3122_v2  ;;  %v2993_v38 = vld [vmem:[%s3860_s7] sm:$0xff]   ;;  %v2999_v24 = vld [vmem:[%s3859_s9 + $0x28] sm:$0xff]   ;;  %vm3498_vm7 = vmpackc.low %vm3124_vm6, %vm2483_vm5  ;;  %s3517_s6 = scalar_lea.vmem %s3864_s3, %s2603_s27 }
  0x29   : > { %v784_v14 = vrot.slane %v782_v10, 1  ;;  %v789_v15 = vrot.slane %v787_v11, 1  ;;  %v2442_v49 = vld [vmem:[%s3861_s2] ss:$0 sm:$0xff]  ;;  %s3865_s2 = sld [smem:[#allocation13_spill]] }
  0x2a   : > { %v913_v22 = vsel %vm910_vm3, %v911_v12, %v912_v13  ;;  %v3001_v26 = vld [vmem:[%s3859_s9 + $0x20] sm:$0xff]  }
  0x2b   : > { %v785_v17 = vor.u32 %v784_v14, %v780_v9  ;;  %2732 = vmatpush3.bf16.msra.mxu1 %v2983_v28  ;;  %v3003_v28 = vld [vmem:[%s3859_s9 + $0x18] sm:$0xff]  }
  0x2c   : > { %2733 = vmatprep.subr.bf16.mxu1 %v3122_v2 }
  0x2d   : > { %v790_v18 = vsel %vm778_vm1, %v785_v17, %v789_v15  ;;  %v2994_v15 = vld [vmem:[%s3859_s9 + $0xb8] sm:$0xff]  }
  0x2e   : > { %2708 = vmatmul.mubr.msk.bf16.vlgmr.msra.gmra.mxu0 %vm803_vm2, %v790_v18 }
  0x2f   : > { %2712 = vmatpush3.bf16.msra.mxu0 %v2974_v16  ;;  %2715 = vmatprep.mubr.msk.bf16.mxu0 %vm3123_vm0, %v3122_v2  ;;  %s762_s28 = scalar_lea.vmem %s3865_s2, %s2603_s27 }
  0x30   : > { %2713 = vmatprep.subr.bf16.mxu0 %v3122_v2  ;;  %2734 = vmatpush3.bf16.msra.mxu1 %v2985_v30  ;;  %v3005_v30 = vld [vmem:[%s3859_s9 + $0x10] sm:$0xff]  }
  0x31   : > { %2735 = vmatprep.subr.bf16.mxu1 %v3122_v2 }
  0x33   : > { %2714 = vmatpush3.bf16.msra.mxu0 %v2975_v19  ;;  %v2995_v19 = vld [vmem:[%s3859_s9 + $0x38] sm:$0xff]  }
  0x34   : > { %2719 = vmatprep.subr.bf16.mxu0 %v3122_v2  ;;  %2736 = vmatpush3.bf16.msra.mxu1 %v2987_v32  ;;  %v3007_v32 = vld [vmem:[%s3859_s9 + $0x8] sm:$0xff]  }
  0x35   : > { %2737 = vmatprep.subr.bf16.mxu1 %v3122_v2 }
  0x36   : > { %2716 = vmatmul.mubr.msk.bf16.vlgmr.msra.gmra.mxu0 %vm803_vm2, %v767_v7 }
  0x37   : > { %2720 = vmatpush3.bf16.msra.mxu0 %v2976_v20  ;;  %2723 = vmatprep.mubr.msk.bf16.mxu0 %vm3123_vm0, %v3122_v2  ;;  %v2996_v20 = vld [vmem:[%s3859_s9 + $0xb0] sm:$0xff]  }
  0x38   : > { %2721 = vmatprep.subr.bf16.mxu0 %v3122_v2  ;;  %2738 = vmatpush3.bf16.msra.mxu1 %v2989_v34 }
  0x39   : > { %2739 = vmatprep.subr.bf16.mxu1 %v3122_v2 }
  0x3b   : > { %2722 = vmatpush3.bf16.msra.mxu0 %v2977_v21 }
  0x3c   : > { %2747 = vmatprep.subr.bf16.mxu0 %v3122_v2  ;;  %2740 = vmatpush3.bf16.msra.mxu1 %v2991_v36  ;;  %v3009_v36 = vld [vmem:[%s3859_s9] sm:$0xff]  }
  0x3d   : > { %2741 = vmatprep.subr.bf16.mxu1 %v3122_v2 }
  0x3e   : > { %2724 = vmatmul.mubr.msk.bf16.vlgmr.msra.gmra.mxu0 %vm803_vm2, %v913_v22  ;;  %v2997_v22 = vld [vmem:[%s3859_s9 + $0x30] sm:$0xff]  }
  0x3f   : > { %2763 = vmatprep.mubr.msk.bf16.mxu0 %vm3123_vm0, %v3122_v2  ;;  %2748 = vmatpush3.bf16.msra.mxu0 %v2978_v23  ;;  %v2998_v23 = vld [vmem:[%s3859_s9 + $0xa8] sm:$0xff]  }
  0x40   : > { %2749 = vmatprep.subr.bf16.mxu0 %v3122_v2  ;;  %2742 = vmatpush3.bf16.msra.mxu1 %v2993_v38  ;;  %v3028_v38 = vld [vmem:[%s3826_s11 + $0xb0] sm:$0xff]  }
  0x41   : > { %2767 = vmatprep.subr.bf16.mxu1 %v3122_v2 }
  0x43   : > { %2750 = vmatpush3.bf16.msra.mxu0 %v2980_v25  ;;  %v3000_v25 = vld [vmem:[%s3859_s9 + $0xa0] sm:$0xff]  }
  0x44   : > { %2751 = vmatprep.subr.bf16.mxu0 %v3122_v2 }
  0x47   : > { %2752 = vmatpush3.bf16.msra.mxu0 %v2982_v27  ;;  %v3002_v27 = vld [vmem:[%s3859_s9 + $0x98] sm:$0xff]  }
  0x48   : > { %2753 = vmatprep.subr.bf16.mxu0 %v3122_v2 }
  0x4b   : > { %2754 = vmatpush3.bf16.msra.mxu0 %v2984_v29  ;;  %v3004_v29 = vld [vmem:[%s3859_s9 + $0x90] sm:$0xff]  }
  0x4c   : > { %2755 = vmatprep.subr.bf16.mxu0 %v3122_v2 }
  0x4f   : > { %2756 = vmatpush3.bf16.msra.mxu0 %v2986_v31  ;;  %v3006_v31 = vld [vmem:[%s3859_s9 + $0x88] sm:$0xff]  }
  0x50   : > { %2757 = vmatprep.subr.bf16.mxu0 %v3122_v2 }
  0x53   : > { %2758 = vmatpush3.bf16.msra.mxu0 %v2988_v33  ;;  %v3008_v33 = vld [vmem:[%s3859_s9 + $0x80] sm:$0xff]  }
  0x54   : > { %2759 = vmatprep.subr.bf16.mxu0 %v3122_v2 }
  0x57   : > { %2760 = vmatpush3.bf16.msra.mxu0 %v2990_v35 }
  0x58   : > { %2761 = vmatprep.subr.bf16.mxu0 %v3122_v2 }
  0x5b   : > { %2762 = vmatpush3.bf16.msra.mxu0 %v2992_v37 }
  0x5c   : > { %2787 = vmatprep.subr.bf16.mxu0 %v3122_v2 }
  0xee   : > { %v841_v39 = vpop.f32.mrf.mxu0 }
  0xf0   : > { %v2709_v40 = vpop.f32.mrf.mxu0 }
  0xf1   : > { %v3011_v40 = vld [vmem:[%s3826_s11 + $0x38] sm:$0xff]  }
  0xf2   : > { %v844_v41 = vpop.f32.mrf.mxu0 }
  0xf4   : > { %v2710_v42 = vpop.f32.mrf.mxu0 }
  0xf5   : > { %v3012_v42 = vld [vmem:[%s3826_s11 + $0x30] sm:$0xff]  }
  0xf6   : > { %v896_v43 = vpop.f32.mrf.mxu0 }
  0xf7   : > { %v897_v47 = vadd.f32 %v896_v43, %v841_v39  ;;  %v3014_v43 = vld [vmem:[%s3826_s11 + $0x28] sm:$0xff]  }
  0xf8   : > { %v2717_v44 = vpop.f32.mrf.mxu0 }
  0xf9   : > { %v3015_v44 = vld [vmem:[%s3826_s11 + $0x70] sm:$0xff]  }
  0xfa   : > { %v899_v45 = vpop.f32.mrf.mxu0 }
  0xfb   : > { %v900_v52 = vadd.f32 %v899_v45, %v844_v41  ;;  %v3013_v41 = vld [vmem:[%s3826_s11 + $0x78] sm:$0xff]   ;;  %v3016_v45 = vld [vmem:[%s3826_s11 + $0x20] sm:$0xff]  }
  0xfc   : > { %v2718_v46 = vpop.f32.mrf.mxu0 }
  0xfd   : > { %v3017_v46 = vld [vmem:[%s3826_s11 + $0x68] sm:$0xff]  }
  0xfe   : > { %v963_v48 = vpop.f32.mrf.mxu0 }
  0xff   : > { %v970_v50 = vadd.f32 %v963_v48, %v897_v47  ;;  %v3018_v47 = vld [vmem:[%s3826_s11 + $0x18] sm:$0xff]   ;;  %v3019_v48 = vld [vmem:[%s3826_s11 + $0x60] sm:$0xff]  }
 0x100   : > { %v2725_v51 = vpop.f32.mrf.mxu0 }
 0x101   : > { %v979_v53 = vadd.f32 %v2442_v49, %v970_v50  ;;  %v3021_v50 = vld [vmem:[%s3826_s11 + $0x58] sm:$0xff]   ;;  %v3022_v51 = vld [vmem:[%s3826_s11 + $0x8] sm:$0xff]  }
 0x102   : > { %v966_v54 = vpop.f32.mrf.mxu0 }
 0x103   : > { %v981_v55 = vmax.f32 %v979_v53, 0.0  ;;  %v971_v56 = vadd.f32 %v966_v54, %v900_v52  ;;  %v3023_v52 = vld [vmem:[%s3826_s11 + $0x50] sm:$0xff]   ;;  %v3024_v53 = vld [vmem:[%s3826_s11] sm:$0xff]   ;;  %v3025_v54 = vld [vmem:[%s3826_s11 + $0x48] sm:$0xff]  }
 0x104   : > { %v2726_v57 = vpop.f32.mrf.mxu0 }
 0x105   : > { %v980_v58 = vadd.f32 %v2442_v49, %v971_v56  ;;  %v3409_v59 = vrot.slane %v981_v55, 7  ;;  %v3020_v49 = vld [vmem:[%s3826_s11 + $0x10] sm:$0xff]   ;;  %v1826_v57 = vlaneseq }
 0x107   : > { %v982_v60 = vmax.f32 %v980_v58, 0.0  ;;  %v1106_v63 = vsel %vm1099_vm4, 0.0, %v3409_v59 }
 0x109   : > { %v983_v61 = vmax.f32 %v981_v55, %v982_v60  ;;  %v1101_v62 = vrot.slane %v982_v60, 7  ;;  %v3026_v55 = vld [vmem:[%s3826_s11 + $0x40] sm:$0xff]  }
 0x10b   : > { %v984_v0 = vrot.slane %v983_v61, 4  ;;  %v3415_v1 = vsel %vm1099_vm4, %v3409_v59, %v1101_v62  ;;  %v1107_v3 = vsel %vm1099_vm4, %v1101_v62, 0.0 }
 0x10c   : > { %v3419_v4 = vpack.c.bf16 %v3415_v1, %v1106_v63  ;;  %v3421_v5 = vpack.c.bf16 %v1107_v3, %v1107_v3  ;;  %v2485_v39 = vpack.c.bf16 %v3415_v1, %v3409_v59  ;;  %v1007_v59 = vld [vmem:[%s3823_s8] sm:$0x1]  ;;  %v1827_v63 = vshrl.u32 %v1826_v57, 7  ;;  %v3037_v57 = vld [vmem:[%s3828_s13 + $0x28] sm:$0xff]  }
 0x10d   : > { %v985_v6 = vmax.f32 %v983_v61, %v984_v0 }
 0x10e   : > { %v1146_v7 = vshll.u32 %v3419_v4, 16  ;;  %v1151_v8 = vshll.u32 %v3421_v5, 16  ;;  %v1144_v10 = vshrl.u32 %v3419_v4, 16  ;;  %v1353_v34 = vrot.slane %v3419_v4, 1 }
 0x10f   : > { %v986_v9 = vrot.slane %v985_v6, 2  ;;  %v1354_v35 = vrot.slane %v3421_v5, 1 }
 0x110   : > { %v1148_v11 = vrot.slane %v1146_v7, 1  ;;  %v1153_v14 = vrot.slane %v1151_v8, 1 }
 0x111   : > { %v987_v12 = vmax.f32 %v985_v6, %v986_v9  ;;  %v1355_v37 = vsel %vm910_vm3, %v1353_v34, %v1354_v35  ;;  %v1828_v6 = vsub.s32 0, %v1827_v63  ;;  %v3587_v9 = vld [vmem:[%s3517_s6] sm:$0xff]   ;;  %v3043_v63 = vld [vmem:[%s3829_s14 + $0x38] sm:$0xff]   ;;  %s3866_s6 = sld [smem:[#allocation11_spill]] }
 0x112   : > { %v1149_v13 = vor.u32 %v1148_v11, %v1144_v10 }
 0x113   : > { %v988_v16 = vrot.slane %v987_v12, 1 }
 0x114   : > { %v1154_v17 = vsel %vm778_vm1, %v1149_v13, %v1153_v14 }
 0x115   : > { %2764 = vmatmul.mubr.bf16.vlgmr.msra.gmra.mxu0 %v1154_v17  ;;  %v989_v18 = vmax.f32 %v987_v12, %v988_v16  ;;  %v2511_v17 = vld [vmem:[%s3825_s10] ss:$0 sm:$0xff] }
 0x116   : > { %2788 = vmatpush3.bf16.msra.mxu0 %v2994_v15  ;;  %2803 = vmatprep.mubr.msk.bf16.mxu0 %vm3123_vm0, %v3122_v2 }
 0x117   : > { %2789 = vmatprep.subr.bf16.mxu0 %v3122_v2  ;;  %v990_v21 = vpack.c.bf16 %v989_v18, %v989_v18 }
 0x119   : > { %2744 = vmatmul.mubr.bf16.vlgmr.msra.gmra.mxu1 %v990_v21 }
 0x11a   : > { %2768 = vmatpush3.bf16.msra.mxu1 %v2995_v19  ;;  %2790 = vmatpush3.bf16.msra.mxu0 %v2996_v20 }
 0x11b   : > { %2769 = vmatprep.subr.bf16.mxu1 %v3122_v2  ;;  %2791 = vmatprep.subr.bf16.mxu0 %v3122_v2 }
 0x11c   : > { %2783 = vmatprep.mubr.msk.bf16.mxu1 %vm3123_vm0, %v3122_v2 }
 0x11e   : > { %2770 = vmatpush3.bf16.msra.mxu1 %v2997_v22  ;;  %2792 = vmatpush3.bf16.msra.mxu0 %v2998_v23 }
 0x11f   : > { %2771 = vmatprep.subr.bf16.mxu1 %v3122_v2  ;;  %2793 = vmatprep.subr.bf16.mxu0 %v3122_v2 }
 0x122   : > { %2772 = vmatpush3.bf16.msra.mxu1 %v2999_v24  ;;  %2794 = vmatpush3.bf16.msra.mxu0 %v3000_v25 }
 0x123   : > { %2773 = vmatprep.subr.bf16.mxu1 %v3122_v2  ;;  %2795 = vmatprep.subr.bf16.mxu0 %v3122_v2 }
 0x126   : > { %2774 = vmatpush3.bf16.msra.mxu1 %v3001_v26  ;;  %2796 = vmatpush3.bf16.msra.mxu0 %v3002_v27 }
 0x127   : > { %2775 = vmatprep.subr.bf16.mxu1 %v3122_v2  ;;  %2797 = vmatprep.subr.bf16.mxu0 %v3122_v2 }
 0x12a   : > { %2776 = vmatpush3.bf16.msra.mxu1 %v3003_v28  ;;  %2798 = vmatpush3.bf16.msra.mxu0 %v3004_v29 }
 0x12b   : > { %2777 = vmatprep.subr.bf16.mxu1 %v3122_v2  ;;  %2799 = vmatprep.subr.bf16.mxu0 %v3122_v2 }
 0x12e   : > { %2778 = vmatpush3.bf16.msra.mxu1 %v3005_v30  ;;  %2800 = vmatpush3.bf16.msra.mxu0 %v3006_v31 }
 0x12f   : > { %2779 = vmatprep.subr.bf16.mxu1 %v3122_v2  ;;  %2801 = vmatprep.subr.bf16.mxu0 %v3122_v2 }
 0x132   : > { %2780 = vmatpush3.bf16.msra.mxu1 %v3007_v32  ;;  %2802 = vmatpush3.bf16.msra.mxu0 %v3008_v33 }
 0x133   : > { %2781 = vmatprep.subr.bf16.mxu1 %v3122_v2  ;;  %2827 = vmatprep.subr.bf16.mxu0 %v3122_v2 }
 0x135   : > { %2804 = vmatmul.mubr.bf16.vlgmr.msra.gmra.mxu0 %v1355_v37 }
 0x136   : > { %2782 = vmatpush3.bf16.msra.mxu1 %v3009_v36  ;;  %2843 = vmatprep.mubr.msk.bf16.mxu0 %vm3123_vm0, %v3122_v2 }
 0x137   : > { %2807 = vmatprep.subr.bf16.mxu1 %v3122_v2  ;;  %2828 = vmatpush3.bf16.msra.mxu0 %v3011_v40 }
 0x138   : > { %2829 = vmatprep.subr.bf16.mxu0 %v3122_v2 }
 0x139   : > { %2784 = vmatmul.mubr.msk.bf16.vlgmr.msra.gmra.mxu1 %vm3498_vm7, %v2485_v39 }
 0x13a   : > { %2823 = vmatprep.mubr.msk.bf16.mxu1 %vm3123_vm0, %v3122_v2  ;;  %2808 = vmatpush3.bf16.msra.mxu1 %v3013_v41 }
 0x13b   : > { %2809 = vmatprep.subr.bf16.mxu1 %v3122_v2  ;;  %2830 = vmatpush3.bf16.msra.mxu0 %v3012_v42 }
 0x13c   : > { %2831 = vmatprep.subr.bf16.mxu0 %v3122_v2 }
 0x13e   : > { %2810 = vmatpush3.bf16.msra.mxu1 %v3015_v44  ;;  %v3027_v44 = vld [vmem:[%s3826_s11 + $0xb8] sm:$0xff]  }
 0x13f   : > { %2832 = vmatpush3.bf16.msra.mxu0 %v3014_v43  ;;  %2811 = vmatprep.subr.bf16.mxu1 %v3122_v2 }
 0x140   : > { %2833 = vmatprep.subr.bf16.mxu0 %v3122_v2 }
 0x142   : > { %2812 = vmatpush3.bf16.msra.mxu1 %v3017_v46  ;;  %v3029_v46 = vld [vmem:[%s3826_s11 + $0xa8] sm:$0xff]  }
 0x143   : > { %2834 = vmatpush3.bf16.msra.mxu0 %v3016_v45  ;;  %2813 = vmatprep.subr.bf16.mxu1 %v3122_v2 }
 0x144   : > { %2835 = vmatprep.subr.bf16.mxu0 %v3122_v2 }
 0x146   : > { %2814 = vmatpush3.bf16.msra.mxu1 %v3019_v48  ;;  %v3031_v48 = vld [vmem:[%s3826_s11 + $0x98] sm:$0xff]  }
 0x147   : > { %2836 = vmatpush3.bf16.msra.mxu0 %v3018_v47  ;;  %2815 = vmatprep.subr.bf16.mxu1 %v3122_v2  ;;  %v3030_v47 = vld [vmem:[%s3826_s11 + $0xa0] sm:$0xff]  }
 0x148   : > { %2837 = vmatprep.subr.bf16.mxu0 %v3122_v2 }
 0x14a   : > { %2816 = vmatpush3.bf16.msra.mxu1 %v3021_v50  ;;  %v3033_v50 = vld [vmem:[%s3826_s11 + $0x88] sm:$0xff]  }
 0x14b   : > { %2838 = vmatpush3.bf16.msra.mxu0 %v3020_v49  ;;  %2817 = vmatprep.subr.bf16.mxu1 %v3122_v2  ;;  %v3032_v49 = vld [vmem:[%s3826_s11 + $0x90] sm:$0xff]  }
 0x14c   : > { %2839 = vmatprep.subr.bf16.mxu0 %v3122_v2 }
 0x14e   : > { %2818 = vmatpush3.bf16.msra.mxu1 %v3023_v52 }
 0x14f   : > { %2840 = vmatpush3.bf16.msra.mxu0 %v3022_v51  ;;  %2819 = vmatprep.subr.bf16.mxu1 %v3122_v2  ;;  %v3034_v51 = vld [vmem:[%s3826_s11 + $0x80] sm:$0xff]  }
 0x150   : > { %2841 = vmatprep.subr.bf16.mxu0 %v3122_v2 }
 0x152   : > { %2820 = vmatpush3.bf16.msra.mxu1 %v3025_v54  ;;  %v3035_v54 = vld [vmem:[%s3828_s13 + $0x38] sm:$0xff]  }
 0x153   : > { %2842 = vmatpush3.bf16.msra.mxu0 %v3024_v53  ;;  %2821 = vmatprep.subr.bf16.mxu1 %v3122_v2 }
 0x154   : > { %2867 = vmatprep.subr.bf16.mxu0 %v3122_v2 }
 0x156   : > { %2822 = vmatpush3.bf16.msra.mxu1 %v3026_v55 }
 0x157   : > { %2847 = vmatprep.subr.bf16.mxu1 %v3122_v2 }
 0x1d5   : > { %v1238_v56 = vpop.f32.mrf.mxu0 }
 0x1d7   : > { %v2765_v58 = vpop.f32.mrf.mxu0 }
 0x1d8   : > { %v3038_v58 = vld [vmem:[%s3828_s13 + $0x20] sm:$0xff]  }
 0x1d9   : > { %v1090_v60 = vpop.f32.mrf.mxu1  ;;  %v1241_v61 = vpop.f32.mrf.mxu0 }
 0x1da   : > { %v1091_v62 = vadd.f32 %v1090_v60, %v1007_v59  ;;  %v3039_v59 = vld [vmem:[%s3828_s13 + $0x18] sm:$0xff]   ;;  %v3040_v60 = vld [vmem:[%s3828_s13 + $0x10] sm:$0xff]  }
 0x1db   : > { %v2745_v0 = vpop.f32.mrf.mxu1  ;;  %v2766_v1 = vpop.f32.mrf.mxu0 }
 0x1dc   : > { %v1096_v3 = vmax.f32 %v1091_v62, 0.0  ;;  %v3042_v62 = vld [vmem:[%s3828_s13] sm:$0xff]   ;;  %v3044_v0 = vld [vmem:[%s3829_s14 + $0x30] sm:$0xff]   ;;  %v3045_v1 = vld [vmem:[%s3829_s14 + $0x28] sm:$0xff]  }
 0x1dd   : > { %v1093_v4 = vpop.f32.mrf.mxu1 }
 0x1de   : > { %v1820_v5 = vpack.c.bf16 %v1096_v3, %v1096_v3  ;;  %v3046_v3 = vld [vmem:[%s3829_s14 + $0x20] sm:$0xff]   ;;  %v3047_v4 = vld [vmem:[%s3829_s14 + $0x18] sm:$0xff]  }
 0x1df   : > { %v2746_v7 = vpop.f32.mrf.mxu1 }
 0x1e0   : > { %v1824_v8 = vpack.i.b16 %v1820_v5, %v1820_v5  ;;  %v3049_v5 = vld [vmem:[%s3829_s14 + $0x10] sm:$0xff]   ;;  %v3051_v7 = vld [vmem:[%s3829_s14] sm:$0xff]  }
 0x1e2   : > { %v3589_v10 = vrot.slane %v1824_v8, %v1828_v6  ;;  %v3050_v6 = vld [vmem:[%s3829_s14 + $0x8] sm:$0xff]  }
 0x1e4   : > { %v1836_v11 = vmul.bf16 %v3587_v9, %v3589_v10 }
 0x1f5   : > { %v1439_v12 = vpop.f32.mrf.mxu0 }
 0x1f7   : > { %v2805_v13 = vpop.f32.mrf.mxu0 }
 0x1f9   : > { %v1327_v14 = vpop.f32.mrf.mxu1  ;;  %v1442_v15 = vpop.f32.mrf.mxu0 }
 0x1fa   : > { %v1328_v16 = vadd.f32 %v1327_v14, %v1238_v56  ;;  %v3036_v56 = vld [vmem:[%s3828_s13 + $0x30] sm:$0xff]  }
 0x1fb   : > { %v2785_v18 = vpop.f32.mrf.mxu1  ;;  %v2806_v19 = vpop.f32.mrf.mxu0 }
 0x1fc   : > { %v1446_v20 = vadd.f32 %v1439_v12, %v1328_v16  ;;  %v2572_v19 = vld [vmem:[%s3827_s12] ss:$0 sm:$0xff] }
 0x1fd   : > { %v1330_v21 = vpop.f32.mrf.mxu1 }
 0x1fe   : > { %v1455_v22 = vadd.f32 %v2511_v17, %v1446_v20  ;;  %v1331_v23 = vadd.f32 %v1330_v21, %v1241_v61  ;;  %v3041_v61 = vld [vmem:[%s3828_s13 + $0x8] sm:$0xff]  }
 0x1ff   : > { %v2786_v24 = vpop.f32.mrf.mxu1 }
 0x200   : > { %v1457_v25 = vmax.f32 %v1455_v22, 0.0  ;;  %v1447_v26 = vadd.f32 %v1442_v15, %v1331_v23 }
 0x202   : > { %v1456_v27 = vadd.f32 %v2511_v17, %v1447_v26  ;;  %v1461_v28 = vrot.slane %v1457_v25, 7 }
 0x204   : > { %v1458_v29 = vmax.f32 %v1456_v27, 0.0  ;;  %v1467_v31 = vsel %vm1099_vm4, 0.0, %v1461_v28 }
 0x206   : > { %v1462_v30 = vrot.slane %v1458_v29, 7  ;;  %v3048_v29 = vld [vmem:[%s762_s28] sm:$0xff]   ;;  %s2601_s28 = sshll.u32 %s3308_s5, 4 }
 0x207   : > { %s752_s3 = scalar_lea.vmem %s3866_s6, %s2601_s28  ;;  %s747_s7 = scalar_lea.vmem %s3867_s4, %s2601_s28 }
 0x208   : > { %v1463_v32 = vsel %vm1099_vm4, %v1461_v28, %v1462_v30  ;;  %v1468_v33 = vsel %vm1099_vm4, %v1462_v30, 0.0  ;;  %s736_s4 = sand.u32 1, %s3112_s30   ;;  %s2598_s28 = sshll.u32 %s3266_s17, 4 }
 0x209   : > { %v1469_v34 = vpack.c.bf16 %v1463_v32, %v1467_v31  ;;  %v1486_v35 = vpack.c.bf16 %v1468_v33, %v1468_v33  ;;  %v2546_v36 = vpack.c.bf16 %v1463_v32, %v1461_v28  ;;  %s737_s6 = scalar_lea.vmem [#allocation3], %s736_s4  ;;  %s3780_s1 = scalar_lea.hbm %s3837_s22, %s2598_s28 }
 0x20a   : > { %s2297_s23 = scalar_lea.sflag [#allocation4], %s736_s4  ;;  %s3126_s17 = smov [#allocation3]  }
 0x20b   : > { %2844 = vmatmul.mubr.msk.bf16.vlgmr.msra.gmra.mxu0 %vm3498_vm7, %v2546_v36  ;;  %v1507_v37 = vshll.u32 %v1469_v34, 16  ;;  %v1512_v39 = vshll.u32 %v1486_v35, 16  ;;  %v1505_v40 = vshrl.u32 %v1469_v34, 16  ;;  %v1714_v52 = vrot.slane %v1469_v34, 1  ;;  %s3064_s2 = sshll.u32 %s3126_s17, 4  ;;  %s3065_s2 = int_to_ptr.vmem [resolvable:$false] %s3064_s2 }
 0x20c   : > { %2883 = vmatprep.mubr.msk.bf16.mxu0 %vm3123_vm0, %v3122_v2  ;;  %v1715_v53 = vrot.slane %v1486_v35, 1  ;;  %2868 = vmatpush3.bf16.msra.mxu0 %v3043_v63 }
 0x20d   : > { %v1509_v41 = vrot.slane %v1507_v37, 1  ;;  %v1514_v43 = vrot.slane %v1512_v39, 1  ;;  %2869 = vmatprep.subr.bf16.mxu0 %v3122_v2  ;;  %v2591_v37 = vld [vmem:[%s3830_s15] ss:$0 sm:$0xff] }
 0x20e   : > { %v1716_v55 = vsel %vm910_vm3, %v1714_v52, %v1715_v53 }
 0x20f   : > { %v1510_v42 = vor.u32 %v1509_v41, %v1505_v40 }
 0x210   : > { %2870 = vmatpush3.bf16.msra.mxu0 %v3044_v0 }
 0x211   : > { %v1515_v45 = vsel %vm778_vm1, %v1510_v42, %v1514_v43  ;;  %2871 = vmatprep.subr.bf16.mxu0 %v3122_v2  ;;  %v2592_v43 = vld [vmem:[%s3831_s16] ss:$0 sm:$0xff] }
 0x212   : > { %2824 = vmatmul.mubr.bf16.vlgmr.msra.gmra.mxu1 %v1515_v45 }
 0x213   : > { %2848 = vmatpush3.bf16.msra.mxu1 %v3027_v44  ;;  %2863 = vmatprep.mubr.msk.bf16.mxu1 %vm3123_vm0, %v3122_v2 }
 0x214   : > { %2849 = vmatprep.subr.bf16.mxu1 %v3122_v2  ;;  %2872 = vmatpush3.bf16.msra.mxu0 %v3045_v1 }
 0x215   : > { %2873 = vmatprep.subr.bf16.mxu0 %v3122_v2 }
 0x217   : > { %2850 = vmatpush3.bf16.msra.mxu1 %v3028_v38 }
 0x218   : > { %2851 = vmatprep.subr.bf16.mxu1 %v3122_v2  ;;  %2874 = vmatpush3.bf16.msra.mxu0 %v3046_v3 }
 0x219   : > { %2875 = vmatprep.subr.bf16.mxu0 %v3122_v2 }
 0x21b   : > { %2852 = vmatpush3.bf16.msra.mxu1 %v3029_v46 }
 0x21c   : > { %2853 = vmatprep.subr.bf16.mxu1 %v3122_v2  ;;  %2876 = vmatpush3.bf16.msra.mxu0 %v3047_v4 }
 0x21d   : > { %2877 = vmatprep.subr.bf16.mxu0 %v3122_v2 }
 0x21f   : > { %2854 = vmatpush3.bf16.msra.mxu1 %v3030_v47 }
 0x220   : > { %2855 = vmatprep.subr.bf16.mxu1 %v3122_v2  ;;  %2878 = vmatpush3.bf16.msra.mxu0 %v3049_v5 }
 0x221   : > { %2879 = vmatprep.subr.bf16.mxu0 %v3122_v2 }
 0x223   : > { %2856 = vmatpush3.bf16.msra.mxu1 %v3031_v48 }
 0x224   : > { %2857 = vmatprep.subr.bf16.mxu1 %v3122_v2  ;;  %2880 = vmatpush3.bf16.msra.mxu0 %v3050_v6 }
 0x225   : > { %2881 = vmatprep.subr.bf16.mxu0 %v3122_v2 }
 0x227   : > { %2858 = vmatpush3.bf16.msra.mxu1 %v3032_v49 }
 0x228   : > { %2859 = vmatprep.subr.bf16.mxu1 %v3122_v2  ;;  %2882 = vmatpush3.bf16.msra.mxu0 %v3051_v7 }
 0x229   : > { %2907 = vmatprep.subr.bf16.mxu0 %v3122_v2 }
 0x22b   : > { %2860 = vmatpush3.bf16.msra.mxu1 %v3033_v50  ;;  %v3125_v50 = vmov 0  }
 0x22c   : > { %2861 = vmatprep.subr.bf16.mxu1 %v3122_v2  ;;  %2970 = vset.pattern.permute.xlu1 %v3125_v50 }
 0x22d   : > { %2971 = vset.pattern.permute.xlu0 %v3125_v50  ;;  %v2218_v50 = vld [vmem:[%s3835_s20 + $0x10] sm:$0xff] }
 0x22f   : > { %2862 = vmatpush3.bf16.msra.mxu1 %v3034_v51  ;;  %v2593_v51 = vld [vmem:[#allocation2] ss:$0 sm:$0xff] }
 0x230   : > { %2887 = vmatprep.subr.bf16.mxu1 %v3122_v2 }
 0x232   : > { %2864 = vmatmul.mubr.bf16.vlgmr.msra.gmra.mxu1 %v1716_v55 }
 0x233   : > { %2888 = vmatpush3.bf16.msra.mxu1 %v3035_v54  ;;  %2903 = vmatprep.mubr.msk.bf16.mxu1 %vm3123_vm0, %v3122_v2 }
 0x234   : > { %2889 = vmatprep.subr.bf16.mxu1 %v3122_v2 }
 0x237   : > { %2890 = vmatpush3.bf16.msra.mxu1 %v3036_v56  ;;  %v2090_v56 = vld [vmem:[%s752_s3] sm:$0xff] }
 0x238   : > { %2891 = vmatprep.subr.bf16.mxu1 %v3122_v2 }
 0x23b   : > { %2892 = vmatpush3.bf16.msra.mxu1 %v3037_v57 }
 0x23c   : > { %2893 = vmatprep.subr.bf16.mxu1 %v3122_v2 }
 0x23f   : > { %2894 = vmatpush3.bf16.msra.mxu1 %v3038_v58 }
 0x240   : > { %2895 = vmatprep.subr.bf16.mxu1 %v3122_v2 }
 0x243   : > { %2896 = vmatpush3.bf16.msra.mxu1 %v3039_v59  ;;  %v2091_v59 = vld [vmem:[%s752_s3 + $0x8] sm:$0xff]  ;;  %s2309_s3 = sshll.u32 %s737_s6, 4  ;;  %s2310_s3 = int_to_ptr.vmem [resolvable:$true] %s2309_s3 }
 0x244   : > { %2897 = vmatprep.subr.bf16.mxu1 %v3122_v2  ;;  %s3060_s24 = scalar_lea.vmem %s2310_s3, 16  ;;  %p3067_p0 = scmp.lt.s32.totalorder %s2310_s3, %s3065_s2 }
 0x245   : > { %p3061_p11 = scmp.ne.s32.totalorder %s2310_s3, %s3060_s24 }
 0x247   : > { %2898 = vmatpush3.bf16.msra.mxu1 %v3040_v60  ;;  %p3062_p12 = pnand %p3061_p11, %p3283_p5 }
 0x248   : > { %2899 = vmatprep.subr.bf16.mxu1 %v3122_v2 }
 0x249   : > { %p3063_p13 = pneg %p3062_p12 }
 0x24b   : > { %2900 = vmatpush3.bf16.msra.mxu1 %v3041_v61 }
 0x24c   : > { %2901 = vmatprep.subr.bf16.mxu1 %v3122_v2 }
 0x24f   : > { %2902 = vmatpush3.bf16.msra.mxu1 %v3042_v62 }
 0x252   : > { %2904 = vmatmul.mubr.bf16.vlgmr.msra.gmra.mxu1 %v1836_v11 }
 0x2cb   : > { %v1688_v8 = vpop.f32.mrf.mxu0 }
 0x2cd   : > { %v2845_v9 = vpop.f32.mrf.mxu0 }
 0x2cf   : > { %v1691_v10 = vpop.f32.mrf.mxu0 }
 0x2d1   : > { %v2846_v11 = vpop.f32.mrf.mxu0 }
 0x2d2   : > { %v1599_v12 = vpop.f32.mrf.mxu1 }
 0x2d3   : > { %v1689_v16 = vadd.f32 %v1688_v8, %v1599_v12 }
 0x2d4   : > { %v2825_v13 = vpop.f32.mrf.mxu1 }
 0x2d6   : > { %v1602_v14 = vpop.f32.mrf.mxu1 }
 0x2d7   : > { %v1692_v21 = vadd.f32 %v1691_v10, %v1602_v14 }
 0x2d8   : > { %v2826_v15 = vpop.f32.mrf.mxu1 }
 0x2f2   : > { %v1800_v17 = vpop.f32.mrf.mxu1 }
 0x2f3   : > { %v1807_v18 = vadd.f32 %v1800_v17, %v1689_v16 }
 0x2f4   : > { %v2865_v20 = vpop.f32.mrf.mxu1 }
 0x2f5   : > { %v1816_v23 = vadd.f32 %v2572_v19, %v1807_v18 }
 0x2f6   : > { %v1803_v22 = vpop.f32.mrf.mxu1 }
 0x2f7   : > { %v1808_v24 = vadd.f32 %v1803_v22, %v1692_v21  ;;  %v1818_v27 = vmax.f32 %v1816_v23, 0.0 }
 0x2f8   : > { %v2866_v25 = vpop.f32.mrf.mxu1 }
 0x2f9   : > { %v1817_v26 = vadd.f32 %v2572_v19, %v1808_v24 }
 0x2fb   : > { %v1819_v28 = vmax.f32 %v1817_v26, 0.0 }
 0x2fd   : > { %v1837_v30 = vpack.c.bf16 %v1819_v28, %v1818_v27 }
 0x2ff   : > { %v1846_v31 = vmul.bf16 %v3048_v29, %v1837_v30  ;;  %v3052_v30 = vld [vmem:[%s3833_s18 + $0x8] sm:$0xff]  }
 0x301   : > { %2884 = vmatmul.mubr.bf16.vlgmr.msra.gmra.mxu0 %v1846_v31  ;;  %v3053_v31 = vld [vmem:[%s3833_s18] sm:$0xff]  }
 0x302   : > { %2911 = vmatprep.mubr.msk.bf16.mxu0 %vm3123_vm0, %v3122_v2  ;;  %2908 = vmatpush3.bf16.msra.mxu0 %v3052_v30 }
 0x303   : > { %2909 = vmatprep.subr.bf16.mxu0 %v3122_v2 }
 0x306   : > { %2910 = vmatpush3.bf16.msra.mxu0 %v3053_v31 }
 0x307   : > { %2915 = vmatprep.subr.mxu0 %v3122_v2 }
 0x312   : > { %v2050_v32 = vpop.f32.mrf.mxu1 }
 0x314   : > { %v2905_v33 = vpop.f32.mrf.mxu1 }
 0x315   : > { %v2140_v33 = vld [vmem:[%s747_s7] sm:$0xff] }
 0x316   : > { %v2053_v34 = vpop.f32.mrf.mxu1 }
 0x318   : > { %v2906_v35 = vpop.f32.mrf.mxu1 }
 0x3c1   : > { %v1961_v36 = vpop.f32.mrf.mxu0 }
 0x3c2   : > { %v2051_v39 = vadd.f32 %v2050_v32, %v1961_v36  ;;  %v2141_v32 = vld [vmem:[%s747_s7 + $0x8] sm:$0xff]  ;;  %s3066_s7 = scalar_lea.vmem %s3065_s2, 32 }
 0x3c3   : > { %v2885_v40 = vpop.f32.mrf.mxu0  ;;  %p3068_p1 = scmp.lt.s32.totalorder %s3066_s7, %s3060_s24 }
 0x3c4   : > { %v2064_v41 = vadd.f32 %v2591_v37, %v2051_v39 }
 0x3c5   : > { %v1964_v42 = vpop.f32.mrf.mxu0  ;;  %p3069_p2 = por %p3068_p1, %p3067_p0 }
 0x3c6   : > { %v2054_v44 = vadd.f32 %v2053_v34, %v1964_v42  ;;  %v2066_v45 = vmax.f32 %v2064_v41, 0.0 }
 0x3c7   : > { %v2886_v38 = vpop.f32.mrf.mxu0  ;;  %p3070_p3 = pnand %p3069_p2, %p3063_p13 }
 0x3c8   : > { %v2065_v46 = vadd.f32 %v2591_v37, %v2054_v44  ;;  %v2075_v47 = vmul.f32 %v2592_v43, %v2066_v45 }
 0x3ca   : > { %v2067_v48 = vmax.f32 %v2065_v46, 0.0  ;;  %2077 = vadd.xlane.f32.xlu0 %v2075_v47 }
 0x3cc   : > { %v2076_v49 = vmul.f32 %v2592_v43, %v2067_v48 }
 0x3ce   : > { %2079 = vadd.xlane.f32.xlu0 %v2076_v49  ;;  %v2219_v49 = vld [vmem:[%s3835_s20 + $0x18] sm:$0xff] }
 0x453   : > { %v2078_v52 = vpop.xlane.xlu0 %2077 }
 0x454   : > { %v2088_v53 = vadd.f32 %v2593_v51, %v2078_v52  ;;  %v2216_v52 = vld [vmem:[%s3835_s20] sm:$0xff] }
 0x456   : > { %2094 = vperm.xlu1 %2970, %v2088_v53   ;;  %v2159_v53 = vld [vmem:[%s3834_s19] sm:$0x1] }
 0x457   : > { %v2080_v54 = vpop.xlane.xlu0 %2079 }
 0x458   : > { %v2089_v55 = vadd.f32 %v2593_v51, %v2080_v54  ;;  %v2217_v51 = vld [vmem:[%s3835_s20 + $0x8] sm:$0xff] }
 0x45a   : > { %2099 = vperm.xlu1 %2970, %v2089_v55  }
 0x4d1   : > { %v2095_v57 = vpop.permute.xlu1 %2094 }
 0x4d2   : > { %v2102_v58 = vadd.f32 %v2095_v57, %v2090_v56 }
 0x4d4   : > { %v2104_v61 = vmul.f32 2.0, %v2102_v58 }
 0x4d5   : > { %v2100_v60 = vpop.permute.xlu1 %2099 }
 0x4d6   : > { %v2103_v62 = vadd.f32 %v2100_v60, %v2091_v59  ;;  %v2107_v0 = vsel %vm2106_vm8, %v2104_v61, -inf }
 0x4d8   : > { %v2105_v63 = vmul.f32 2.0, %v2103_v62 }
 0x4da   : > { %v2108_v1 = vsel %vm2106_vm8, %v2105_v63, -inf }
 0x4db   : > { %v2109_v3 = vmax.f32 %v2107_v0, %v2108_v1 }
 0x4dd   : > { %v2110_v4 = vrot.slane %v2109_v3, 4 }
 0x4df   : > { %v2111_v5 = vmax.f32 %v2109_v3, %v2110_v4 }
 0x4e1   : > { %v2112_v6 = vrot.slane %v2111_v5, 2 }
 0x4e3   : > { %v2113_v7 = vmax.f32 %v2111_v5, %v2112_v6 }
 0x4e5   : > { %v2114_v8 = vrot.slane %v2113_v7, 1 }
 0x4e7   : > { %v2115_v9 = vmax.f32 %v2113_v7, %v2114_v8 }
 0x4e9   : > { %v2116_v10 = vsub.f32 %v2104_v61, %v2115_v9  ;;  %v2117_v11 = vsub.f32 %v2105_v63, %v2115_v9 }
 0x4eb   : > { %v2118_v12 = vmul.f32 1.442695, %v2116_v10  ;;  %v2120_v13 = vmul.f32 1.442695, %v2117_v11 }
 0x4ed   : > { %3054 = vpow2.f32 %v2118_v12 }
 0x4ee   : > { %3056 = vpow2.f32 %v2120_v13 }
 0x4fa   : > { %v3055_v14 = vpop.eup %3054 }
 0x4fb   : > { %v3057_v15 = vpop.eup %3056  ;;  %v2122_v16 = vsel %vm2106_vm8, %v3055_v14, 0.0 }
 0x4fc   : > { %v2123_v17 = vsel %vm2106_vm8, %v3057_v15, 0.0 }
 0x4fd   : > { %v2124_v18 = vadd.f32 %v2123_v17, %v2122_v16 }
 0x4ff   : > { %v2125_v19 = vrot.slane %v2124_v18, 4 }
 0x501   : > { %v2126_v20 = vadd.f32 %v2125_v19, %v2124_v18 }
 0x503   : > { %v2127_v21 = vrot.slane %v2126_v20, 2 }
 0x505   : > { %v2128_v22 = vadd.f32 %v2127_v21, %v2126_v20 }
 0x507   : > { %v2129_v23 = vrot.slane %v2128_v22, 1 }
 0x509   : > { %v2130_v24 = vadd.f32 %v2129_v23, %v2128_v22 }
 0x50b   : > { %3058 = vrcp.f32 %v2130_v24 }
 0x518   : > { %v3059_v25 = vpop.eup %3058 }
 0x519   : > { %v2133_v26 = vmul.f32 %v3059_v25, %v3057_v15  ;;  %v2132_v27 = vmul.f32 %v3059_v25, %v3055_v14 }
 0x51b   : > { %v2137_v28 = vsel %vm2106_vm8, %v2133_v26, -inf  ;;  %v2134_v29 = vsel %vm2106_vm8, %v2132_v27, -inf }
 0x51c   : > { %2138 = vmax.xlane.f32.xlu1 %v2137_v28  ;;  %2135 = vmax.xlane.f32.xlu0 %v2134_v29 }
 0x5a5   : > { %v2139_v34 = vpop.xlane.xlu1 %2138  ;;  %v2136_v35 = vpop.xlane.xlu0 %2135 }
 0x5a6   : > { %v2143_v36 = vmul.f32 %v2141_v32, %v2139_v34  ;;  %v2142_v37 = vmul.f32 %v2140_v33, %v2136_v35 }
 0x5a8   : > { %v2145_v39 = vsel %vm803_vm2, %v2143_v36, 0.0  ;;  %v2144_v40 = vsel %vm803_vm2, %v2142_v37, 0.0 }
 0x5a9   : > { %v2146_v41 = vadd.f32 %v2145_v39, %v2144_v40 }
 0x5ab   : > { %v2147_v42 = vrot.slane %v2146_v41, 4 }
 0x5ad   : > { %v2148_v43 = vadd.f32 %v2147_v42, %v2146_v41 }
 0x5af   : > { %v2149_v44 = vrot.slane %v2148_v43, 2 }
 0x5b1   : > { %v2150_v45 = vadd.f32 %v2149_v44, %v2148_v43 }
 0x5b3   : > { %v2151_v38 = vrot.slane %v2150_v45, 1 }
 0x5b5   : > { %v2152_v46 = vadd.f32 %v2151_v38, %v2150_v45 }
 0x5b7   : > { %v2153_v47 = vmul.f32 0.1, %v2152_v46 }
 0x5b9   : > { %v2154_v48 = vpack.c.bf16 %v2153_v47, %v2153_v47 }
 0x5bb   : > { %2912 = vmatmul.mubr.msk.bf16.vlgmr.msra.gmra.mxu0 %vm803_vm2, %v2154_v48 }
 0x5bc   : > { %2916 = vmatpush3.msra.mxu0 %v2219_v49  ;;  %2923 = vmatprep.mubr.msk.f32.mxu0 %vm3123_vm0, %v3122_v2 }
 0x5bd   : > { %2917 = vmatprep.subr.mxu0 %v3122_v2 }
 0x5be   : > { %2918 = vmatpush3.msra.mxu0 %v2218_v50 }
 0x5bf   : > { %2919 = vmatprep.subr.mxu0 %v3122_v2 }
 0x5c0   : > { %2920 = vmatpush3.msra.mxu0 %v2217_v51 }
 0x5c1   : > { %2921 = vmatprep.subr.mxu0 %v3122_v2  ;;  %v2220_v2 = vld [vmem:[%s3836_s21] sm:$0x1] }
 0x5c2   : > { %2922 = vmatpush3.msra.mxu0 %v2216_v52 }
 0x67b   : > { %v2209_v54 = vpop.f32.mrf.mxu0 }
 0x67c   : > { %v2210_v55 = vadd.f32 %v2209_v54, %v2159_v53 }
 0x67d   : > { %v2913_v56 = vpop.f32.mrf.mxu0 }
 0x67e   : > { %v2215_v57 = vmax.f32 %v2210_v55, 0.0 }
 0x67f   : > { %v2212_v58 = vpop.f32.mrf.mxu0 }
 0x680   : > { %2924 = vmatmul.mubr.msk.f32.vlgmr.msra.gmra.mxu0 %vm803_vm2, %v2215_v57 }
 0x681   : > { %v2914_v59 = vpop.f32.mrf.mxu0 }
 0x740   : > { %v2290_v60 = vpop.f32.mrf.mxu0 }
 0x741   : > { %v2291_v61 = vadd.f32 %v2290_v60, %v2220_v2 }
 0x742   : > { %v2925_v62 = vpop.f32.mrf.mxu0 }
 0x743   : > { %2295 = vst.msk [vmem:[%s737_s6] sm:$0x1] %vm2294_vm9, %v2291_v61 }
 0x744   : > { %3073 = shalt.err (!%p3070_p3)
}
 0x745   : > { %s3074_s5 = scalar_lea.hbm %s3780_s1, 16  ;;  %s3078_s6 = scalar_lea.hbm %s3837_s22, 32 }
 0x746   : > { %p3075_p4 = scmp.ne.s32.totalorder %s3780_s1, %s3074_s5  ;;  %p3079_p9 = scmp.lt.s32.totalorder %s3780_s1, %s3837_s22 }
 0x747   : > { %p3080_p10 = scmp.lt.s32.totalorder %s3078_s6, %s3074_s5 }
 0x748   : > { %p3076_p7 = pnand %p3075_p4, %p3283_p5 }
 0x749   : > { %p3081_p11 = por %p3080_p10, %p3079_p9 }
 0x74a   : > { %p3077_p8 = pneg %p3076_p7 }
 0x74c   : > { %p3082_p12 = pnand %p3081_p11, %p3077_p8 }
 0x74e   : > { %3085 = shalt.err (!%p3082_p12)
}
 0x74f   : > { %2927 = dma.vmem_to_hbm [thread:$0]  (%p3283_p5), %s2310_s3, 16, %s3780_s1, %s2297_s23  }
 0x750 PF: > { %p2933_p13 = scmp.ge.s32.totalorder %s3120_s0, 2  ;;  %s2321_s24 = sand.u32 1, %s3108_s29  }
 0x751   : > { %s2322_s17 = scalar_lea.sflag [#allocation4], %s2321_s24 }
 0x752   : > { %p2930_p0 = pnand %p2933_p13, %p3287_p6 }
 0x754   : > { %p2931_p1 = pneg %p2930_p0 }
 0x756   : > { %3103 = dma.done.wait (%p2931_p1), %s2322_s17, 16  }
 0x757   : > { %3105 = vsyncadd (%p2931_p1), %s2322_s17, 4294967280  ;;  %s3868_s0 = sld [smem:[#allocation7_spill]]  ;;  %s3871_s29 = smov %s3112_s30 }
 0x758   : > { %s3869_s2 = sld [smem:[#allocation6_spill]] }
 0x759   : > { %s3870_s4 = sld [smem:[#allocation8_spill]] }
 0x75d   : > { %p34_p2 = scmp.ge.s32.totalorder %s3868_s0, 4  }
 0x75e   : > { %s3872_s30 = smov %s3869_s2 }
 0x75f   :  { %36 = sbr.rel (!%p34_p2) target bundleno = 13 (0xd), region = 161 }
 0x764   :  { %2326 = vsyncpa [#allocation4], 1 }
 0x765   :  { %2328 = vsyncpa [#allocation4 + $0x1], 1 }

</bundles_post_ra>
